<compile_context>
chip_gen: v6e
topology: v6e:2x2x1
jax: 0.10.0
libtpu: 0.0.40
codegen_flags: <defaults>
</compile_context>

<pallas_src>
import functools

import jax
import jax.numpy as jnp
from jax import lax
from jax.experimental import pallas as pl
from jax.experimental.pallas import tpu as pltpu

_LANE = 128


def _round_up(n, m):
    return -(-n // m) * m


def _bilstm_kernel(len_ref, x_ref,
                   wih_ref, whh_f_ref, whh_b_ref, b_ref,
                   wfc_ref, bfc_ref,
                   out_ref,
                   h_ref, xp_ref,
                   *, hidden_pad):
    T, Bb, I = x_ref.shape
    Hp = hidden_pad
    Op = out_ref.shape[-1]
    G = 4 * Hp                                    # per-direction gate width

    lengths = len_ref[...]                        # (Bb, 1) int32
    zeros = jnp.zeros((Bb, Hp), jnp.float32)

    # ---- both directions' input projections in ONE GEMM, biases folded in ----
    x2d = x_ref[...].reshape(T * Bb, I).astype(jnp.bfloat16)        # (T*Bb, I)
    xp_ref[...] = (jnp.dot(x2d, wih_ref[...],
                           preferred_element_type=jnp.float32)
                   + b_ref[...]).reshape(T, Bb, 2 * G)

    # ---- hidden-to-hidden weights loaded once (bf16) ----
    whh_f = whh_f_ref[...]
    whh_b = whh_b_ref[...]

    def cell(pre, h, c, whh):
        # pre: (Bb, 4Hp) f32 precomputed x @ W_ih + b;  h, c: (Bb, Hp) f32
        gates = pre + jnp.dot(h.astype(jnp.bfloat16), whh,
                              preferred_element_type=jnp.float32)
        # gate slices are 128-lane aligned because H is padded to a multiple of 128
        i = jax.nn.sigmoid(gates[:, 0 * Hp:1 * Hp])
        f = jax.nn.sigmoid(gates[:, 1 * Hp:2 * Hp])
        g = jnp.tanh(gates[:, 2 * Hp:3 * Hp])
        o = jax.nn.sigmoid(gates[:, 3 * Hp:4 * Hp])
        c_new = f * c + i * g
        h_new = o * jnp.tanh(c_new)
        return h_new, c_new

    # ---- fused fwd + bwd recurrence: two independent (h, c) chains / step ----
    def step(t, carry):
        hf, cf, hb, cb = carry
        tb = T - 1 - t

        pre_f = xp_ref[t, :, pl.ds(0, G)]         # fwd gates for step t
        pre_b = xp_ref[tb, :, pl.ds(G, G)]        # bwd gates for step T-1-t
        hf_new, cf_new = cell(pre_f, hf, cf, whh_f)
        hb_new, cb_new = cell(pre_b, hb, cb, whh_b)

        vf = t < lengths                          # (Bb, 1) bool
        vb = tb < lengths
        # packed hidden buffer: fwd in lanes [0, Hp), bwd in [Hp, 2Hp)
        h_ref[t, :, pl.ds(0, Hp)] = jnp.where(vf, hf_new, 0.0)
        h_ref[tb, :, pl.ds(Hp, Hp)] = jnp.where(vb, hb_new, 0.0)
        return (jnp.where(vf, hf_new, hf), jnp.where(vf, cf_new, cf),
                jnp.where(vb, hb_new, hb), jnp.where(vb, cb_new, cb))

    lax.fori_loop(0, T, step, (zeros, zeros, zeros, zeros))

    # ---- final Linear: one GEMM over the packed (fwd | bwd) hidden buffer ----
    h2d = h_ref[...].reshape(T * Bb, 2 * Hp).astype(jnp.bfloat16)
    out_ref[...] = (jnp.dot(h2d, wfc_ref[...],
                            preferred_element_type=jnp.float32)
                    + bfc_ref[...]).reshape(T, Bb, Op)


def bilstm_classifier(x, lengths, params, *, block_b=8):
    """x: (B, T, input_size) f32, lengths: (B,) int -> (B, T, output_size) f32."""
    B, T, I = x.shape
    H = params["whh_f"].shape[0]
    O = params["wfc"].shape[1]

    Hp = _round_up(H, _LANE)          # lane-aligned gate slices / hidden dim
    Op = _round_up(O, _LANE)          # lane-dense output stores
    Bp = _round_up(B, block_b)        # sublane / batch-tile padding

    # time-major, batch-padded input (padded rows get length 0 -> zero hidden)
    x_tm = jnp.transpose(x.astype(jnp.float32), (1, 0, 2))
    x_tm = jnp.pad(x_tm, ((0, 0), (0, Bp - B), (0, 0)))
    len2d = jnp.pad(lengths.astype(jnp.int32), (0, Bp - B)).reshape(Bp, 1)

    def pad_gates(w):
        # (rows, 4H) -> (rows, 4Hp): gate g occupies lane-aligned cols [g*Hp, g*Hp+H)
        return jnp.concatenate(
            [jnp.pad(p, ((0, 0), (0, Hp - H))) for p in jnp.split(w, 4, axis=1)],
            axis=1)

    def pad_hidden_rows(w):           # (H, C) -> (Hp, C); padded h lanes are always 0
        return jnp.pad(w, ((0, Hp - H), (0, 0)))

    # fused input weights / biases: forward occupies lanes [0, 4Hp), backward [4Hp, 8Hp)
    wih = jnp.concatenate([pad_gates(params["wih_f"]),
                           pad_gates(params["wih_b"])], axis=1).astype(jnp.bfloat16)
    b = jnp.concatenate([pad_gates(params["b_f"]),
                         pad_gates(params["b_b"])], axis=1)                 # (1, 8Hp) f32
    whh_f = pad_hidden_rows(pad_gates(params["whh_f"])).astype(jnp.bfloat16)  # (Hp, 4Hp)
    whh_b = pad_hidden_rows(pad_gates(params["whh_b"])).astype(jnp.bfloat16)
    # fc weight laid out to match the packed (fwd | bwd) hidden buffer
    wfc = jnp.concatenate(
        [jnp.pad(params["wfc"][:H], ((0, Hp - H), (0, Op - O))),
         jnp.pad(params["wfc"][H:], ((0, Hp - H), (0, Op - O)))],
        axis=0).astype(jnp.bfloat16)                                        # (2Hp, Op)
    bfc = jnp.pad(params["bfc"], ((0, 0), (0, Op - O)))                     # (1, Op) f32

    kernel = functools.partial(_bilstm_kernel, hidden_pad=Hp)
    full = lambda bi: (0, 0)          # weights: same (resident) block every grid step

    out_tm = pl.pallas_call(
        kernel,
        out_shape=jax.ShapeDtypeStruct((T, Bp, Op), jnp.float32),
        grid=(Bp // block_b,),
        in_specs=[
            pl.BlockSpec((block_b, 1), lambda bi: (bi, 0)),           # lengths
            pl.BlockSpec((T, block_b, I), lambda bi: (0, bi, 0)),     # x (time-major)
            pl.BlockSpec((I, 8 * Hp), full),                          # wih (fwd|bwd)
            pl.BlockSpec((Hp, 4 * Hp), full),                         # whh_f
            pl.BlockSpec((Hp, 4 * Hp), full),                         # whh_b
            pl.BlockSpec((1, 8 * Hp), full),                          # b (fwd|bwd)
            pl.BlockSpec((2 * Hp, Op), full),                         # wfc (fwd|bwd rows)
            pl.BlockSpec((1, Op), full),                              # bfc
        ],
        out_specs=pl.BlockSpec((T, block_b, Op), lambda bi: (0, bi, 0)),
        scratch_shapes=[
            pltpu.VMEM((T, block_b, 2 * Hp), jnp.float32),            # packed hidden states
            pltpu.VMEM((T, block_b, 8 * Hp), jnp.float32),            # fused input projections
        ],
        compiler_params=pltpu.CompilerParams(
            dimension_semantics=("parallel",)),   # batch tiles pipeline / shard over cores
    )(len2d, x_tm, wih, whh_f, whh_b, b, wfc, bfc)

    out = jnp.transpose(out_tm, (1, 0, 2))        # (Bp, T, Op)
    return out[:B, :, :O]


def init_params(key, input_size, hidden_size, output_size):
    """Deterministic init mirroring nn.LSTM/nn.Linear parameter shapes.

    PyTorch stores weight_ih_l0 as (4H, I); we keep the transposed (I, 4H)
    layout so the kernel can do x @ W directly.  b = b_ih + b_hh.
    """
    k = 1.0 / jnp.sqrt(jnp.float32(hidden_size))
    keys = jax.random.split(key, 10)
    u = lambda kk, shape: jax.random.uniform(kk, shape, jnp.float32, -k, k)
    return dict(
        wih_f=u(keys[0], (input_size, 4 * hidden_size)),
        whh_f=u(keys[1], (hidden_size, 4 * hidden_size)),
        b_f=u(keys[2], (1, 4 * hidden_size)) + u(keys[3], (1, 4 * hidden_size)),
        wih_b=u(keys[4], (input_size, 4 * hidden_size)),
        whh_b=u(keys[5], (hidden_size, 4 * hidden_size)),
        b_b=u(keys[6], (1, 4 * hidden_size)) + u(keys[7], (1, 4 * hidden_size)),
        wfc=u(keys[8], (2 * hidden_size, output_size)),
        bfc=u(keys[9], (1, output_size)),
    )


def reference(x, lengths, params):
    """Pure-JAX f32 reference of the packed BiLSTM + fc forward pass."""
    B, T, _ = x.shape
    H = params["whh_f"].shape[0]

    def run(wih, whh, b, reverse):
        def step(carry, t):
            h, c = carry
            xt = x[:, t, :]
            gates = xt @ wih + h @ whh + b
            i = jax.nn.sigmoid(gates[:, :H])
            f = jax.nn.sigmoid(gates[:, H:2 * H])
            g = jnp.tanh(gates[:, 2 * H:3 * H])
            o = jax.nn.sigmoid(gates[:, 3 * H:])
            c_new = f * c + i * g
            h_new = o * jnp.tanh(c_new)
            valid = (t < lengths)[:, None]
            return ((jnp.where(valid, h_new, h), jnp.where(valid, c_new, c)),
                    jnp.where(valid, h_new, 0.0))

        ts = jnp.arange(T)
        if reverse:
            ts = ts[::-1]
        zeros = jnp.zeros((B, H), jnp.float32)
        _, outs = lax.scan(step, (zeros, zeros), ts)   # (T, B, H) in processing order
        if reverse:
            outs = outs[::-1]
        return jnp.transpose(outs, (1, 0, 2))          # (B, T, H)

    hf = run(params["wih_f"], params["whh_f"], params["b_f"], reverse=False)
    hb = run(params["wih_b"], params["whh_b"], params["b_b"], reverse=True)
    hcat = jnp.concatenate([hf, hb], axis=-1)
    return hcat @ params["wfc"] + params["bfc"]


if __name__ == "__main__":
    B, T, I, H, O = 2, 8, 4, 64, 3
    key = jax.random.PRNGKey(0)
    kx, kp = jax.random.split(key)

    x = jax.random.normal(kx, (B, T, I), jnp.float32)
    lengths = jnp.array([8, 5], jnp.int32)
    params = init_params(kp, I, H, O)

    out = bilstm_classifier(x, lengths, params)
    out = jax.block_until_ready(out)

    # pad_packed_sequence trims the time axis to max(lengths) (glue, not kernel).
    t_out = int(jnp.max(lengths))
    out = out[:, :t_out, :]

    ref = reference(x, lengths, params)[:, :t_out, :]
    assert out.shape == (B, t_out, O), out.shape
    max_err = float(jnp.max(jnp.abs(out - ref)))
    # bf16-in / f32-accumulate matmuls inside the kernel -> looser tolerance vs f32 ref.
    assert jnp.allclose(out, ref, atol=3e-2, rtol=3e-2), max_err

    print("KERNEL_OK")
</pallas_src>

<mosaic_0001>
module attributes {stable_mosaic.version = 11 : i64} {
  func.func @_bilstm_kernel(%arg0: i32, %arg1: memref<8x1xi32, #tpu.memory_space<vmem>>, %arg2: memref<8x8x4xf32, #tpu.memory_space<vmem>>, %arg3: memref<4x1024xbf16, #tpu.memory_space<vmem>>, %arg4: memref<128x512xbf16, #tpu.memory_space<vmem>>, %arg5: memref<128x512xbf16, #tpu.memory_space<vmem>>, %arg6: memref<1x1024xf32, #tpu.memory_space<vmem>>, %arg7: memref<256x128xbf16, #tpu.memory_space<vmem>>, %arg8: memref<1x128xf32, #tpu.memory_space<vmem>>, %arg9: memref<8x8x128xf32, #tpu.memory_space<vmem>>, %arg10: memref<8x8x256xf32, #tpu.memory_space<vmem>>, %arg11: memref<8x8x1024xf32, #tpu.memory_space<vmem>>) attributes {dimension_semantics = [#tpu.dimension_semantics<parallel>], iteration_bounds = array<i64: 1>, scalar_prefetch = 0 : i64, scratch_operands = 2 : i64, tpu.core_type = #tpu.core_type<tc>, window_params = [{transform_indices = @transform_0, window_bounds = array<i64: 8, 1>}, {transform_indices = @transform_1, window_bounds = array<i64: 8, 8, 4>}, {pipeline_mode = #tpu.pipeline_mode<synchronous>, transform_indices = @transform_2, window_bounds = array<i64: 4, 1024>}, {pipeline_mode = #tpu.pipeline_mode<synchronous>, transform_indices = @transform_3, window_bounds = array<i64: 128, 512>}, {pipeline_mode = #tpu.pipeline_mode<synchronous>, transform_indices = @transform_4, window_bounds = array<i64: 128, 512>}, {pipeline_mode = #tpu.pipeline_mode<synchronous>, transform_indices = @transform_5, window_bounds = array<i64: 1, 1024>}, {pipeline_mode = #tpu.pipeline_mode<synchronous>, transform_indices = @transform_6, window_bounds = array<i64: 256, 128>}, {pipeline_mode = #tpu.pipeline_mode<synchronous>, transform_indices = @transform_7, window_bounds = array<i64: 1, 128>}, {transform_indices = @transform_8, window_bounds = array<i64: 8, 8, 128>}]} {
    %c0 = arith.constant 0 : index
    %c0_0 = arith.constant 0 : index
    %0 = vector.load %arg1[%c0, %c0_0] : memref<8x1xi32, #tpu.memory_space<vmem>>, vector<8x1xi32>
    %cst = arith.constant 0.000000e+00 : f32
    %1 = vector.broadcast %cst : f32 to vector<8x128xf32>
    %c0_1 = arith.constant 0 : index
    %c0_2 = arith.constant 0 : index
    %c0_3 = arith.constant 0 : index
    %2 = vector.load %arg2[%c0_1, %c0_2, %c0_3] : memref<8x8x4xf32, #tpu.memory_space<vmem>>, vector<8x8x4xf32>
    %3 = vector.shape_cast %2 : vector<8x8x4xf32> to vector<64x4xf32>
    %4 = arith.truncf %3 : vector<64x4xf32> to vector<64x4xbf16>
    %c0_4 = arith.constant 0 : index
    %c0_5 = arith.constant 0 : index
    %5 = vector.load %arg3[%c0_4, %c0_5] : memref<4x1024xbf16, #tpu.memory_space<vmem>>, vector<4x1024xbf16>
    %cst_6 = arith.constant dense<0.000000e+00> : vector<64x1024xf32>
    %6 = tpu.matmul %4, %5, %cst_6 {dimension_numbers = #tpu.dot_dimension_numbers<[1], [0], [0], [1], [0, 0, 1, 1], [], []>} : vector<64x4xbf16>, vector<4x1024xbf16>, vector<64x1024xf32> -> vector<64x1024xf32>
    %c0_7 = arith.constant 0 : index
    %c0_8 = arith.constant 0 : index
    %7 = vector.load %arg6[%c0_7, %c0_8] : memref<1x1024xf32, #tpu.memory_space<vmem>>, vector<1x1024xf32>
    %8 = vector.broadcast %7 : vector<1x1024xf32> to vector<64x1024xf32>
    %9 = arith.addf %6, %8 : vector<64x1024xf32>
    %10 = vector.shape_cast %9 : vector<64x1024xf32> to vector<8x8x1024xf32>
    %c0_9 = arith.constant 0 : index
    %c0_10 = arith.constant 0 : index
    %c0_11 = arith.constant 0 : index
    %11 = vector.load %arg11[%c0_9, %c0_10, %c0_11] : memref<8x8x1024xf32, #tpu.memory_space<vmem>>, vector<8x8x1024xf32>
    tpu.vector_store %arg11[%c0_9, %c0_10, %c0_11], %10 {strides = array<i32>} : memref<8x8x1024xf32, #tpu.memory_space<vmem>>, vector<8x8x1024xf32>,
    %c0_12 = arith.constant 0 : index
    %c0_13 = arith.constant 0 : index
    %12 = vector.load %arg4[%c0_12, %c0_13] : memref<128x512xbf16, #tpu.memory_space<vmem>>, vector<128x512xbf16>
    %c0_14 = arith.constant 0 : index
    %c0_15 = arith.constant 0 : index
    %13 = vector.load %arg5[%c0_14, %c0_15] : memref<128x512xbf16, #tpu.memory_space<vmem>>, vector<128x512xbf16>
    %c0_i32 = arith.constant 0 : i32
    %c8_i32 = arith.constant 8 : i32
    %14 = arith.addi %c0_i32, %c8_i32 : i32
    %c1_i32 = arith.constant 1 : i32
    %15:4 = scf.for %arg12 = %c0_i32 to %14 step %c1_i32 iter_args(%arg13 = %1, %arg14 = %1, %arg15 = %1, %arg16 = %1) -> (vector<8x128xf32>, vector<8x128xf32>, vector<8x128xf32>, vector<8x128xf32>)  : i32 {
      %c7_i32 = arith.constant 7 : i32
      %26 = arith.subi %c7_i32, %arg12 : i32
      %27 = arith.index_cast %arg12 : i32 to index
      %c0_28 = arith.constant 0 : index
      %c0_29 = arith.constant 0 : index
      %28 = vector.load %arg11[%27, %c0_28, %c0_29] : memref<8x8x1024xf32, #tpu.memory_space<vmem>>, vector<1x8x512xf32>
      %29 = vector.shape_cast %28 : vector<1x8x512xf32> to vector<8x512xf32>
      %30 = arith.index_cast %26 : i32 to index
      %c0_30 = arith.constant 0 : index
      %c512 = arith.constant 512 : index
      %31 = vector.load %arg11[%30, %c0_30, %c512] : memref<8x8x1024xf32, #tpu.memory_space<vmem>>, vector<1x8x512xf32>
      %32 = vector.shape_cast %31 : vector<1x8x512xf32> to vector<8x512xf32>
      %33 = arith.truncf %arg13 : vector<8x128xf32> to vector<8x128xbf16>
      %cst_31 = arith.constant dense<0.000000e+00> : vector<8x512xf32>
      %34 = tpu.matmul %33, %12, %cst_31 {dimension_numbers = #tpu.dot_dimension_numbers<[1], [0], [0], [1], [0, 0, 1, 1], [], []>} : vector<8x128xbf16>, vector<128x512xbf16>, vector<8x512xf32> -> vector<8x512xf32>
      %35 = arith.addf %29, %34 : vector<8x512xf32>
      %36 = vector.extract_strided_slice %35 {offsets = [0, 0], sizes = [8, 128], strides = [1, 1]} : vector<8x512xf32> to vector<8x128xf32>
      %37 = arith.negf %36 : vector<8x128xf32>
      %38 = math.exp %37 : vector<8x128xf32>
      %cst_32 = arith.constant 1.000000e+00 : f32
      %39 = vector.broadcast %cst_32 : f32 to vector<8x128xf32>
      %40 = arith.addf %39, %38 : vector<8x128xf32>
      %41 = arith.divf %39, %40 : vector<8x128xf32>
      %42 = vector.extract_strided_slice %35 {offsets = [0, 128], sizes = [8, 128], strides = [1, 1]} : vector<8x512xf32> to vector<8x128xf32>
      %43 = arith.negf %42 : vector<8x128xf32>
      %44 = math.exp %43 : vector<8x128xf32>
      %cst_33 = arith.constant 1.000000e+00 : f32
      %45 = vector.broadcast %cst_33 : f32 to vector<8x128xf32>
      %46 = arith.addf %45, %44 : vector<8x128xf32>
      %47 = arith.divf %45, %46 : vector<8x128xf32>
      %48 = vector.extract_strided_slice %35 {offsets = [0, 256], sizes = [8, 128], strides = [1, 1]} : vector<8x512xf32> to vector<8x128xf32>
      %49 = math.tanh %48 : vector<8x128xf32>
      %50 = vector.extract_strided_slice %35 {offsets = [0, 384], sizes = [8, 128], strides = [1, 1]} : vector<8x512xf32> to vector<8x128xf32>
      %51 = arith.negf %50 : vector<8x128xf32>
      %52 = math.exp %51 : vector<8x128xf32>
      %cst_34 = arith.constant 1.000000e+00 : f32
      %53 = vector.broadcast %cst_34 : f32 to vector<8x128xf32>
      %54 = arith.addf %53, %52 : vector<8x128xf32>
      %55 = arith.divf %53, %54 : vector<8x128xf32>
      %56 = arith.mulf %47, %arg14 : vector<8x128xf32>
      %57 = arith.mulf %41, %49 : vector<8x128xf32>
      %58 = arith.addf %56, %57 : vector<8x128xf32>
      %59 = math.tanh %58 : vector<8x128xf32>
      %60 = arith.mulf %55, %59 : vector<8x128xf32>
      %61 = arith.truncf %arg15 : vector<8x128xf32> to vector<8x128xbf16>
      %cst_35 = arith.constant dense<0.000000e+00> : vector<8x512xf32>
      %62 = tpu.matmul %61, %13, %cst_35 {dimension_numbers = #tpu.dot_dimension_numbers<[1], [0], [0], [1], [0, 0, 1, 1], [], []>} : vector<8x128xbf16>, vector<128x512xbf16>, vector<8x512xf32> -> vector<8x512xf32>
      %63 = arith.addf %32, %62 : vector<8x512xf32>
      %64 = vector.extract_strided_slice %63 {offsets = [0, 0], sizes = [8, 128], strides = [1, 1]} : vector<8x512xf32> to vector<8x128xf32>
      %65 = arith.negf %64 : vector<8x128xf32>
      %66 = math.exp %65 : vector<8x128xf32>
      %cst_36 = arith.constant 1.000000e+00 : f32
      %67 = vector.broadcast %cst_36 : f32 to vector<8x128xf32>
      %68 = arith.addf %67, %66 : vector<8x128xf32>
      %69 = arith.divf %67, %68 : vector<8x128xf32>
      %70 = vector.extract_strided_slice %63 {offsets = [0, 128], sizes = [8, 128], strides = [1, 1]} : vector<8x512xf32> to vector<8x128xf32>
      %71 = arith.negf %70 : vector<8x128xf32>
      %72 = math.exp %71 : vector<8x128xf32>
      %cst_37 = arith.constant 1.000000e+00 : f32
      %73 = vector.broadcast %cst_37 : f32 to vector<8x128xf32>
      %74 = arith.addf %73, %72 : vector<8x128xf32>
      %75 = arith.divf %73, %74 : vector<8x128xf32>
      %76 = vector.extract_strided_slice %63 {offsets = [0, 256], sizes = [8, 128], strides = [1, 1]} : vector<8x512xf32> to vector<8x128xf32>
      %77 = math.tanh %76 : vector<8x128xf32>
      %78 = vector.extract_strided_slice %63 {offsets = [0, 384], sizes = [8, 128], strides = [1, 1]} : vector<8x512xf32> to vector<8x128xf32>
      %79 = arith.negf %78 : vector<8x128xf32>
      %80 = math.exp %79 : vector<8x128xf32>
      %cst_38 = arith.constant 1.000000e+00 : f32
      %81 = vector.broadcast %cst_38 : f32 to vector<8x128xf32>
      %82 = arith.addf %81, %80 : vector<8x128xf32>
      %83 = arith.divf %81, %82 : vector<8x128xf32>
      %84 = arith.mulf %75, %arg16 : vector<8x128xf32>
      %85 = arith.mulf %69, %77 : vector<8x128xf32>
      %86 = arith.addf %84, %85 : vector<8x128xf32>
      %87 = math.tanh %86 : vector<8x128xf32>
      %88 = arith.mulf %83, %87 : vector<8x128xf32>
      %89 = vector.broadcast %arg12 : i32 to vector<8x1xi32>
      %90 = arith.cmpi slt, %89, %0 : vector<8x1xi32>
      %91 = vector.broadcast %26 : i32 to vector<8x1xi32>
      %92 = arith.cmpi slt, %91, %0 : vector<8x1xi32>
      %cst_39 = arith.constant 0.000000e+00 : f32
      %93 = vector.shape_cast %90 : vector<8x1xi1> to vector<8x1xi1>
      %94 = vector.broadcast %93 : vector<8x1xi1> to vector<8x128xi1>
      %95 = vector.broadcast %cst_39 : f32 to vector<8x128xf32>
      %96 = arith.select %94, %60, %95 : vector<8x128xi1>, vector<8x128xf32>
      %97 = arith.index_cast %arg12 : i32 to index
      %c0_40 = arith.constant 0 : index
      %c0_41 = arith.constant 0 : index
      %98 = vector.load %arg10[%97, %c0_40, %c0_41] : memref<8x8x256xf32, #tpu.memory_space<vmem>>, vector<1x8x128xf32>
      %99 = vector.shape_cast %98 : vector<1x8x128xf32> to vector<8x128xf32>
      %100 = vector.shape_cast %96 : vector<8x128xf32> to vector<1x8x128xf32>
      tpu.vector_store %arg10[%97, %c0_40, %c0_41], %100 {strides = array<i32>} : memref<8x8x256xf32, #tpu.memory_space<vmem>>, vector<1x8x128xf32>,
      %cst_42 = arith.constant 0.000000e+00 : f32
      %101 = vector.shape_cast %92 : vector<8x1xi1> to vector<8x1xi1>
      %102 = vector.broadcast %101 : vector<8x1xi1> to vector<8x128xi1>
      %103 = vector.broadcast %cst_42 : f32 to vector<8x128xf32>
      %104 = arith.select %102, %88, %103 : vector<8x128xi1>, vector<8x128xf32>
      %105 = arith.index_cast %26 : i32 to index
      %c0_43 = arith.constant 0 : index
      %c128 = arith.constant 128 : index
      %106 = vector.load %arg10[%105, %c0_43, %c128] : memref<8x8x256xf32, #tpu.memory_space<vmem>>, vector<1x8x128xf32>
      %107 = vector.shape_cast %106 : vector<1x8x128xf32> to vector<8x128xf32>
      %108 = vector.shape_cast %104 : vector<8x128xf32> to vector<1x8x128xf32>
      tpu.vector_store %arg10[%105, %c0_43, %c128], %108 {strides = array<i32>} : memref<8x8x256xf32, #tpu.memory_space<vmem>>, vector<1x8x128xf32>,
      %109 = vector.shape_cast %90 : vector<8x1xi1> to vector<8x1xi1>
      %110 = vector.broadcast %109 : vector<8x1xi1> to vector<8x128xi1>
      %111 = arith.select %110, %60, %arg13 : vector<8x128xi1>, vector<8x128xf32>
      %112 = vector.shape_cast %90 : vector<8x1xi1> to vector<8x1xi1>
      %113 = vector.broadcast %112 : vector<8x1xi1> to vector<8x128xi1>
      %114 = arith.select %113, %58, %arg14 : vector<8x128xi1>, vector<8x128xf32>
      %115 = vector.shape_cast %92 : vector<8x1xi1> to vector<8x1xi1>
      %116 = vector.broadcast %115 : vector<8x1xi1> to vector<8x128xi1>
      %117 = arith.select %116, %88, %arg15 : vector<8x128xi1>, vector<8x128xf32>
      %118 = vector.shape_cast %92 : vector<8x1xi1> to vector<8x1xi1>
      %119 = vector.broadcast %118 : vector<8x1xi1> to vector<8x128xi1>
      %120 = arith.select %119, %86, %arg16 : vector<8x128xi1>, vector<8x128xf32>
      scf.yield %111, %114, %117, %120 : vector<8x128xf32>, vector<8x128xf32>, vector<8x128xf32>, vector<8x128xf32>
    }
    %c8_i32_16 = arith.constant 8 : i32
    %c0_17 = arith.constant 0 : index
    %c0_18 = arith.constant 0 : index
    %c0_19 = arith.constant 0 : index
    %16 = vector.load %arg10[%c0_17, %c0_18, %c0_19] : memref<8x8x256xf32, #tpu.memory_space<vmem>>, vector<8x8x256xf32>
    %17 = vector.shape_cast %16 : vector<8x8x256xf32> to vector<64x256xf32>
    %18 = arith.truncf %17 : vector<64x256xf32> to vector<64x256xbf16>
    %c0_20 = arith.constant 0 : index
    %c0_21 = arith.constant 0 : index
    %19 = vector.load %arg7[%c0_20, %c0_21] : memref<256x128xbf16, #tpu.memory_space<vmem>>, vector<256x128xbf16>
    %cst_22 = arith.constant dense<0.000000e+00> : vector<64x128xf32>
    %20 = tpu.matmul %18, %19, %cst_22 {dimension_numbers = #tpu.dot_dimension_numbers<[1], [0], [0], [1], [0, 0, 1, 1], [], []>} : vector<64x256xbf16>, vector<256x128xbf16>, vector<64x128xf32> -> vector<64x128xf32>
    %c0_23 = arith.constant 0 : index
    %c0_24 = arith.constant 0 : index
    %21 = vector.load %arg8[%c0_23, %c0_24] : memref<1x128xf32, #tpu.memory_space<vmem>>, vector<1x128xf32>
    %22 = vector.broadcast %21 : vector<1x128xf32> to vector<64x128xf32>
    %23 = arith.addf %20, %22 : vector<64x128xf32>
    %24 = vector.shape_cast %23 : vector<64x128xf32> to vector<8x8x128xf32>
    %c0_25 = arith.constant 0 : index
    %c0_26 = arith.constant 0 : index
    %c0_27 = arith.constant 0 : index
    %25 = vector.load %arg9[%c0_25, %c0_26, %c0_27] : memref<8x8x128xf32, #tpu.memory_space<vmem>>, vector<8x8x128xf32>
    tpu.vector_store %arg9[%c0_25, %c0_26, %c0_27], %24 {strides = array<i32>} : memref<8x8x128xf32, #tpu.memory_space<vmem>>, vector<8x8x128xf32>,
    return
  }
  func.func @transform_0(%arg0: i32) -> (i32, i32) {
    %c0_i32 = arith.constant 0 : i32
    %c0_i32_0 = arith.constant 0 : i32
    return %arg0, %c0_i32 : i32, i32
  }
  func.func @transform_1(%arg0: i32) -> (i32, i32, i32) {
    %c0_i32 = arith.constant 0 : i32
    %c0_i32_0 = arith.constant 0 : i32
    %c0_i32_1 = arith.constant 0 : i32
    return %c0_i32, %arg0, %c0_i32_0 : i32, i32, i32
  }
  func.func @transform_2(%arg0: i32) -> (i32, i32) {
    %c0_i32 = arith.constant 0 : i32
    %c0_i32_0 = arith.constant 0 : i32
    %c0_i32_1 = arith.constant 0 : i32
    return %c0_i32, %c0_i32_0 : i32, i32
  }
  func.func @transform_3(%arg0: i32) -> (i32, i32) {
    %c0_i32 = arith.constant 0 : i32
    %c0_i32_0 = arith.constant 0 : i32
    %c0_i32_1 = arith.constant 0 : i32
    return %c0_i32, %c0_i32_0 : i32, i32
  }
  func.func @transform_4(%arg0: i32) -> (i32, i32) {
    %c0_i32 = arith.constant 0 : i32
    %c0_i32_0 = arith.constant 0 : i32
    %c0_i32_1 = arith.constant 0 : i32
    return %c0_i32, %c0_i32_0 : i32, i32
  }
  func.func @transform_5(%arg0: i32) -> (i32, i32) {
    %c0_i32 = arith.constant 0 : i32
    %c0_i32_0 = arith.constant 0 : i32
    %c0_i32_1 = arith.constant 0 : i32
    return %c0_i32, %c0_i32_0 : i32, i32
  }
  func.func @transform_6(%arg0: i32) -> (i32, i32) {
    %c0_i32 = arith.constant 0 : i32
    %c0_i32_0 = arith.constant 0 : i32
    %c0_i32_1 = arith.constant 0 : i32
    return %c0_i32, %c0_i32_0 : i32, i32
  }
  func.func @transform_7(%arg0: i32) -> (i32, i32) {
    %c0_i32 = arith.constant 0 : i32
    %c0_i32_0 = arith.constant 0 : i32
    %c0_i32_1 = arith.constant 0 : i32
    return %c0_i32, %c0_i32_0 : i32, i32
  }
  func.func @transform_8(%arg0: i32) -> (i32, i32, i32) {
    %c0_i32 = arith.constant 0 : i32
    %c0_i32_0 = arith.constant 0 : i32
    %c0_i32_1 = arith.constant 0 : i32
    return %c0_i32, %arg0, %c0_i32_0 : i32, i32, i32
  }
}

</mosaic_0001>

<bundles_post_ra>
// kernel: tpu_custom_call.1
= control target key start
LH: loop header
LB: loop body
LE: loop exit
PB: predicated region body
PF: predicated region fallthrough
CT: control target
= control target key end

     0   :  { %13 = vsyncpa [#allocation5], 0  ;;  %s2479_s0 = inlined_call_operand.vmem [shape: s32[8,1], index: 0, kind: input, shape index: {}]   ;;  %s2480_s1 = inlined_call_operand.vmem [shape: f32[8,8,4], index: 1, kind: input, shape index: {}]   ;;  %s2481_s2 = inlined_call_operand.vmem [shape: bf16[4,1024], index: 2, kind: input, shape index: {}]   ;;  %s2482_s3 = inlined_call_operand.hbm [shape: bf16[128,512], index: 3, kind: input, shape index: {}]   ;;  %s2483_s4 = inlined_call_operand.hbm [shape: bf16[128,512], index: 4, kind: input, shape index: {}]   ;;  %s2484_s5 = inlined_call_operand.vmem [shape: f32[1,1024], index: 5, kind: input, shape index: {}]   ;;  %s2485_s6 = inlined_call_operand.hbm [shape: bf16[256,128], index: 6, kind: input, shape index: {}]   ;;  %s2486_s7 = inlined_call_operand.vmem [shape: f32[1,128], index: 7, kind: input, shape index: {}]   ;;  %s2487_s8 = inlined_call_operand.hbm [shape: f32[8,8,128], index: 8, kind: output, shape index: {}]  }
   0x1   :  { %14 = vsyncpa [#allocation8], 0 }
   0x2   :  { %15 = vsyncpa [#allocation6], 0  ;;  %s1898_s27 = smov [#allocation7]   ;;  %s1899_s29 = smov [#allocation4]  }
   0x3   :  { %s39_s28 = sshll.u32 %s1898_s27, 4  ;;  %s27_s30 = sshll.u32 %s1899_s29, 4  ;;  %s40_s28 = int_to_ptr.vmem [resolvable:$true] %s39_s28  ;;  %s28_s30 = int_to_ptr.vmem [resolvable:$true] %s27_s30 }
   0x4   :  { %s1780_s9 = scalar_lea.vmem %s40_s28, 4096  ;;  %p1785_p1 = scmp.lt.s32.totalorder %s40_s28, %s40_s28 }
   0x5   :  { %p1781_p0 = scmp.ne.s32.totalorder %s40_s28, %s1780_s9  ;;  %p1786_p2 = scmp.lt.s32.totalorder %s1780_s9, %s1780_s9 }
   0x7   :  { %p1787_p3 = por %p1786_p2, %p1785_p1 }
   0x9   :  { %p1788_p4 = pnand %p1787_p3, %p1781_p0 }
   0xb   :  { %1791 = shalt.err (!%p1788_p4)
}
   0xc   :  { %s1900_s10 = smov 256   ;;  %s1901_s11 = smov 16  }
   0xd   :  { %45 = dma.hbm_to_vmem [thread:$0]  %s2483_s4, 4096, %s40_s28, [#allocation8], %s1900_s10, %s1900_s10, %s1901_s11  }
   0xe   :  { %s1800_s14 = scalar_lea.vmem %s28_s30, 4096  ;;  %p1805_p6 = scmp.lt.s32.totalorder %s28_s30, %s28_s30 }
   0xf   :  { %p1801_p5 = scmp.ne.s32.totalorder %s28_s30, %s1800_s14  ;;  %p1806_p7 = scmp.lt.s32.totalorder %s1800_s14, %s1800_s14 }
  0x11   :  { %p1807_p8 = por %p1806_p7, %p1805_p6 }
  0x13   :  { %p1808_p9 = pnand %p1807_p8, %p1801_p5 }
  0x15   :  { %1811 = shalt.err (!%p1808_p9)
}
  0x16   :  { %33 = dma.hbm_to_vmem [thread:$0]  %s2482_s3, 4096, %s28_s30, [#allocation5], %s1900_s10, %s1900_s10, %s1901_s11  }
  0x17   :  { %s1902_s17 = smov [#allocation9]  }
  0x18   :  { %s53_s18 = sshll.u32 %s1902_s17, 4  ;;  %s54_s18 = int_to_ptr.vmem [resolvable:$true] %s53_s18 }
  0x19   :  { %s1820_s19 = scalar_lea.vmem %s54_s18, 2048  ;;  %p1825_p11 = scmp.lt.s32.totalorder %s54_s18, %s54_s18 }
  0x1a   :  { %p1821_p10 = scmp.ne.s32.totalorder %s54_s18, %s1820_s19  ;;  %p1826_p12 = scmp.lt.s32.totalorder %s1820_s19, %s1820_s19 }
  0x1c   :  { %p1827_p13 = por %p1826_p12, %p1825_p11 }
  0x1e   :  { %p1828_p0 = pnand %p1827_p13, %p1821_p10 }
  0x20   :  { %1831 = shalt.err (!%p1828_p0)
}
  0x21   :  { %s1903_s4 = smov 64   ;;  %s1904_s20 = smov 4  }
  0x22   :  { %59 = dma.hbm_to_vmem [thread:$0]  %s2485_s6, 2048, %s54_s18, [#allocation8], %s1903_s4, %s1903_s4, %s1904_s20  }
  0x23   :  { %1872 = dma.done.wait [#allocation5], 4096  }
  0x24   :  { %1873 = vsyncadd [#allocation5], 4294963200 }
  0x25   :  { %1874 = dma.done.wait [#allocation8], 6144  }
  0x26   :  { %1875 = vsyncadd [#allocation8], 4294961152  ;;  %v2488_v0 = vmov 0   ;;  %v1970_v1 = vld [vmem:[%s2479_s0] sm:$0xff]  ;;  %v1974_v3 = vld [vmem:[#allocation4 + $0x8] sm:$0xff]  ;;  %v89_v34 = vlaneseq  ;;  %vm178_vm0 = vcmask 1041408  }
  0x27   :  { %235 = vmatprep.mubr.bf16.mxu0 %v2488_v0  ;;  %308 = vmatprep.mubr.bf16.mxu1 %v2488_v0  ;;  %2537 = vst [vmem:[#allocation14_spill] sm:$0xff] %v1970_v1  ;;  %v1972_v2 = vld [vmem:[#allocation4] sm:$0xff]  ;;  %2539 = vst [vmem:[#allocation16_spill] sm:$0xff] %v1974_v3  ;;  %v1976_v4 = vld [vmem:[#allocation4 + $0x10] sm:$0xff]  ;;  %v1906_v35 = vmov 1983009808  }
  0x28   :  { %2538 = vst [vmem:[#allocation15_spill] sm:$0xff] %v1972_v2  ;;  %2540 = vst [vmem:[#allocation17_spill] sm:$0xff] %v1976_v4  ;;  %v1978_v5 = vld [vmem:[#allocation4 + $0x18] sm:$0xff]  ;;  %v1980_v6 = vld [vmem:[#allocation4 + $0x20] sm:$0xff]  ;;  %v133_v36 = vunpack.c.l.s4 %v1906_v35  ;;  %v2060_v49 = vshrl.u32 %v89_v34, 7  ;;  %vm165_vm1 = vcmask 31744  }
  0x29   :  { %2541 = vst [vmem:[#allocation18_spill] sm:$0xff] %v1978_v5  ;;  %2542 = vst [vmem:[#allocation19_spill] sm:$0xff] %v1980_v6  ;;  %v1982_v7 = vld [vmem:[#allocation4 + $0x28] sm:$0xff]  ;;  %v1984_v8 = vld [vmem:[#allocation4 + $0x30] sm:$0xff] }
  0x2a   :  { %2543 = vst [vmem:[#allocation20_spill] sm:$0xff] %v1982_v7  ;;  %2544 = vst [vmem:[#allocation21_spill] sm:$0xff] %v1984_v8  ;;  %v1986_v9 = vld [vmem:[#allocation4 + $0x38] sm:$0xff]  ;;  %v1988_v10 = vld [vmem:[#allocation4 + $0x40] sm:$0xff]  ;;  %v134_v50 = vunpack.c.0.s8 %v133_v36 }
  0x2b   :  { %2545 = vst [vmem:[#allocation22_spill] sm:$0xff] %v1986_v9  ;;  %2546 = vst [vmem:[#allocation23_spill] sm:$0xff] %v1988_v10  ;;  %v1990_v11 = vld [vmem:[#allocation4 + $0x48] sm:$0xff]  ;;  %v1992_v12 = vld [vmem:[#allocation4 + $0x50] sm:$0xff] }
  0x2c   :  { %2547 = vst [vmem:[#allocation24_spill] sm:$0xff] %v1990_v11  ;;  %2548 = vst [vmem:[#allocation25_spill] sm:$0xff] %v1992_v12  ;;  %v1994_v13 = vld [vmem:[#allocation4 + $0x58] sm:$0xff]  ;;  %v1996_v14 = vld [vmem:[#allocation4 + $0x60] sm:$0xff]  ;;  %v137_v63 = vsub.s32 %v134_v50, %v2060_v49 }
  0x2d   :  { %2549 = vst [vmem:[#allocation26_spill] sm:$0xff] %v1994_v13  ;;  %2550 = vst [vmem:[#allocation27_spill] sm:$0xff] %v1996_v14  ;;  %v1998_v15 = vld [vmem:[#allocation4 + $0x68] sm:$0xff]  ;;  %v2000_v16 = vld [vmem:[#allocation4 + $0x70] sm:$0xff] }
  0x2e   :  { %2551 = vst [vmem:[#allocation28_spill] sm:$0xff] %v1998_v15  ;;  %2552 = vst [vmem:[#allocation29_spill] sm:$0xff] %v2000_v16  ;;  %v2002_v17 = vld [vmem:[#allocation4 + $0x78] sm:$0xff]  ;;  %v2004_v18 = vld [vmem:[#allocation4 + $0x80] sm:$0xff] }
  0x2f   :  { %2553 = vst [vmem:[#allocation30_spill] sm:$0xff] %v2002_v17  ;;  %v2006_v19 = vld [vmem:[#allocation4 + $0x88] sm:$0xff]  ;;  %v2008_v20 = vld [vmem:[#allocation4 + $0x90] sm:$0xff]  ;;  %v2010_v21 = vld [vmem:[#allocation4 + $0x98] sm:$0xff] }
  0x30   :  { %v2012_v22 = vld [vmem:[#allocation4 + $0xa0] sm:$0xff]  ;;  %v2014_v23 = vld [vmem:[#allocation4 + $0xa8] sm:$0xff]  ;;  %v2016_v24 = vld [vmem:[#allocation4 + $0xb0] sm:$0xff] }
  0x31   :  { %v2018_v25 = vld [vmem:[#allocation4 + $0xb8] sm:$0xff]  ;;  %v2020_v26 = vld [vmem:[#allocation4 + $0xc0] sm:$0xff]  ;;  %v2022_v27 = vld [vmem:[#allocation4 + $0xc8] sm:$0xff] }
  0x32   :  { %v2024_v28 = vld [vmem:[#allocation4 + $0xd0] sm:$0xff]  ;;  %v2026_v29 = vld [vmem:[#allocation4 + $0xd8] sm:$0xff]  ;;  %v2028_v30 = vld [vmem:[#allocation4 + $0xe0] sm:$0xff] }
  0x33   :  { %v2030_v31 = vld [vmem:[#allocation4 + $0xe8] sm:$0xff]  ;;  %v2032_v32 = vld [vmem:[#allocation4 + $0xf0] sm:$0xff]  ;;  %v2034_v33 = vld [vmem:[#allocation4 + $0xf8] sm:$0xff] }
  0x34   :  { %v2036_v37 = vld [vmem:[#allocation7] sm:$0xff]  ;;  %v2038_v38 = vld [vmem:[#allocation7 + $0x8] sm:$0xff]  ;;  %v2040_v39 = vld [vmem:[#allocation7 + $0x10] sm:$0xff] }
  0x35   :  { %2554 = vst [vmem:[#allocation31_spill] sm:$0xff] %v2036_v37  ;;  %2555 = vst [vmem:[#allocation32_spill] sm:$0xff] %v2038_v38  ;;  %v2042_v40 = vld [vmem:[#allocation7 + $0x18] sm:$0xff]  ;;  %v2044_v41 = vld [vmem:[#allocation7 + $0x20] sm:$0xff] }
  0x36   :  { %2556 = vst [vmem:[#allocation33_spill] sm:$0xff] %v2040_v39  ;;  %2557 = vst [vmem:[#allocation34_spill] sm:$0xff] %v2042_v40  ;;  %v2046_v42 = vld [vmem:[#allocation7 + $0x28] sm:$0xff]  ;;  %v2048_v43 = vld [vmem:[#allocation7 + $0x30] sm:$0xff] }
  0x37   :  { %2558 = vst [vmem:[#allocation35_spill] sm:$0xff] %v2044_v41  ;;  %2559 = vst [vmem:[#allocation36_spill] sm:$0xff] %v2046_v42  ;;  %v2050_v44 = vld [vmem:[#allocation7 + $0x38] sm:$0xff]  ;;  %v2052_v45 = vld [vmem:[#allocation7 + $0x40] sm:$0xff] }
  0x38   :  { %2560 = vst [vmem:[#allocation37_spill] sm:$0xff] %v2048_v43  ;;  %2561 = vst [vmem:[#allocation38_spill] sm:$0xff] %v2050_v44  ;;  %v2054_v46 = vld [vmem:[#allocation7 + $0x48] sm:$0xff]  ;;  %v2056_v47 = vld [vmem:[#allocation7 + $0x50] sm:$0xff] }
  0x39   :  { %2562 = vst [vmem:[#allocation39_spill] sm:$0xff] %v2052_v45  ;;  %2563 = vst [vmem:[#allocation40_spill] sm:$0xff] %v2054_v46  ;;  %v2058_v48 = vld [vmem:[#allocation7 + $0x58] sm:$0xff]  ;;  %v2062_v51 = vld [vmem:[#allocation7 + $0x60] sm:$0xff] }
  0x3a   :  { %2564 = vst [vmem:[#allocation41_spill] sm:$0xff] %v2056_v47  ;;  %2565 = vst [vmem:[#allocation42_spill] sm:$0xff] %v2058_v48  ;;  %v2064_v52 = vld [vmem:[#allocation7 + $0x68] sm:$0xff]  ;;  %v2066_v53 = vld [vmem:[#allocation7 + $0x70] sm:$0xff] }
  0x3b   :  { %2566 = vst [vmem:[#allocation43_spill] sm:$0xff] %v2062_v51  ;;  %2567 = vst [vmem:[#allocation44_spill] sm:$0xff] %v2064_v52  ;;  %v2068_v54 = vld [vmem:[#allocation7 + $0x78] sm:$0xff]  ;;  %v2070_v55 = vld [vmem:[#allocation7 + $0x80] sm:$0xff] }
  0x3c   :  { %2568 = vst [vmem:[#allocation45_spill] sm:$0xff] %v2066_v53  ;;  %2569 = vst [vmem:[#allocation46_spill] sm:$0xff] %v2068_v54  ;;  %v2072_v56 = vld [vmem:[#allocation7 + $0x88] sm:$0xff]  ;;  %v2074_v57 = vld [vmem:[#allocation7 + $0x90] sm:$0xff] }
  0x3d   :  { %2570 = vst [vmem:[#allocation47_spill] sm:$0xff] %v2070_v55  ;;  %2571 = vst [vmem:[#allocation48_spill] sm:$0xff] %v2072_v56  ;;  %v2076_v58 = vld [vmem:[#allocation7 + $0x98] sm:$0xff]  ;;  %v2078_v59 = vld [vmem:[#allocation7 + $0xa0] sm:$0xff] }
  0x3e   :  { %2572 = vst [vmem:[#allocation49_spill] sm:$0xff] %v2074_v57  ;;  %2573 = vst [vmem:[#allocation50_spill] sm:$0xff] %v2076_v58  ;;  %v2080_v60 = vld [vmem:[#allocation7 + $0xa8] sm:$0xff]  ;;  %v2082_v61 = vld [vmem:[#allocation7 + $0xb0] sm:$0xff] }
  0x3f   :  { %2574 = vst [vmem:[#allocation51_spill] sm:$0xff] %v2080_v60  ;;  %v2084_v62 = vld [vmem:[#allocation7 + $0xb8] sm:$0xff]  ;;  %v2087_v34 = vld [vmem:[#allocation7 + $0xc0] sm:$0xff]  ;;  %v2089_v35 = vld [vmem:[#allocation7 + $0xc8] sm:$0xff] }
  0x40   :  { %2575 = vst [vmem:[#allocation52_spill] sm:$0xff] %v2084_v62  ;;  %v2091_v36 = vld [vmem:[#allocation7 + $0xd0] sm:$0xff]  ;;  %v2093_v0 = vld [vmem:[#allocation7 + $0xd8] sm:$0xff]  ;;  %v2095_v38 = vld [vmem:[#allocation7 + $0xe0] sm:$0xff] }
  0x41   :  { %2576 = vst [vmem:[#allocation53_spill] sm:$0xff] %v2093_v0  ;;  %v2097_v40 = vld [vmem:[#allocation7 + $0xe8] sm:$0xff]  ;;  %v2099_v37 = vld [vmem:[#allocation7 + $0xf0] sm:$0xff]  ;;  %v2101_v39 = vld [vmem:[#allocation7 + $0xf8] sm:$0xff] }
  0x42   :  { %v85_v50 = vld [vmem:[%s2481_s2] sm:$0xff]  ;;  %v86_v41 = vld [vmem:[%s2481_s2 + $0x8] sm:$0xff] }
  0x43   :  { %v138_v42 = vrot.slane %v85_v50, %v137_v63  ;;  %v131_v44 = vcombine.high %v85_v50, %v85_v50  ;;  %v73_v43 = vld [vmem:[%s2480_s1] sm:$0xff]  ;;  %v74_v46 = vld [vmem:[%s2480_s1 + $0x8] sm:$0xff]  ;;  %v155_v48 = vrot.slane %v86_v41, %v137_v63  ;;  %v148_v45 = vcombine.high %v86_v41, %v86_v41 }
  0x44   :  { %v81_v58 = vpack.c.bf16 %v74_v46, %v73_v43  ;;  %v75_v43 = vld [vmem:[%s2480_s1 + $0x10] sm:$0xff] }
  0x45   :  { %v146_v47 = vcombine.high %v138_v42, %v138_v42  ;;  %v180_v52 = vsel %vm178_vm0, %v138_v42, 0  ;;  %v145_v54 = vrot.slane %v131_v44, %v137_v63  ;;  %v163_v51 = vcombine.high %v155_v48, %v155_v48 }
  0x46   :  { %v162_v50 = vrot.slane %v148_v45, %v137_v63  ;;  %v192_v41 = vsel %vm178_vm0, %v155_v48, 0  ;;  %v2577_v44 = vmov 0   ;;  %v76_v45 = vld [vmem:[%s2480_s1 + $0x18] sm:$0xff]  ;;  %v78_v48 = vld [vmem:[%s2480_s1 + $0x28] sm:$0xff]  ;;  %v99_v63 = vsub.s32 2, %v2060_v49 }
  0x47   :  { %1493 = vmatprep.subr.msk.bf16.mxu0 %vm178_vm0, %v146_v47  ;;  %v147_v53 = vcombine.high %v145_v54, %v145_v54  ;;  %v186_v56 = vsel %vm178_vm0, %v145_v54, 0  ;;  %v82_v46 = vpack.c.bf16 %v76_v45, %v75_v43  ;;  %v77_v47 = vld [vmem:[%s2480_s1 + $0x20] sm:$0xff] }
  0x48   :  { %218 = vmatpush1.bf16.msra.mxu0 %v180_v52  ;;  %v164_v55 = vcombine.high %v162_v50, %v162_v50  ;;  %v198_v42 = vsel %vm178_vm0, %v162_v50, 0  ;;  %v79_v52 = vld [vmem:[%s2480_s1 + $0x30] sm:$0xff] }
  0x49   :  { %1498 = vmatprep.subr.msk.bf16.mxu1 %vm178_vm0, %v147_v53  ;;  %1503 = vmatprep.subr.msk.bf16.mxu0 %vm178_vm0, %v163_v51  ;;  %v83_v51 = vpack.c.bf16 %v78_v48, %v77_v47  ;;  %v80_v53 = vld [vmem:[%s2480_s1 + $0x38] sm:$0xff] }
  0x4a   :  { %291 = vmatpush1.bf16.msra.mxu1 %v186_v56  ;;  %v84_v54 = vpack.c.bf16 %v80_v53, %v79_v52  ;;  %v2175_v56 = vld [vmem:[%s2484_s5] sm:$0xff]  ;;  %s2280_s5 = smov 0  }
  0x4b   :  { %1494 = vmatmul.mubr.msk.bf16.vlgmr.msra.gmra.mxu0 %vm165_vm1, %v81_v58  ;;  %1508 = vmatprep.subr.msk.bf16.mxu1 %vm178_vm0, %v164_v55  ;;  %v91_v55 = vsub.s32 0, %v2060_v49 }
  0x4c   :  { %364 = vmatpush1.bf16.msra.mxu0 %v192_v41  ;;  %245 = vmatprep.mubr.bf16.mxu0 %v2577_v44  ;;  %v103_v41 = vsub.s32 3, %v2060_v49 }
  0x4d   :  { %1499 = vmatmul.mubr.msk.bf16.vlgmr.msra.gmra.mxu1 %vm165_vm1, %v81_v58  ;;  %v2180_v50 = vrot.slane %v2175_v56, %v91_v55 }
  0x4e   :  { %437 = vmatpush1.bf16.msra.mxu1 %v198_v42  ;;  %318 = vmatprep.mubr.bf16.mxu1 %v2577_v44 }
  0x53   :  { %1495 = vmatmul.mubr.msk.bf16.gmra.mxu0 %vm165_vm1, %v82_v46 }
  0x54   :  { %255 = vmatprep.mubr.bf16.mxu0 %v2577_v44 }
  0x55   :  { %1500 = vmatmul.mubr.msk.bf16.gmra.mxu1 %vm165_vm1, %v82_v46 }
  0x56   :  { %328 = vmatprep.mubr.bf16.mxu1 %v2577_v44 }
  0x5b   :  { %1496 = vmatmul.mubr.msk.bf16.gmra.mxu0 %vm165_vm1, %v83_v51 }
  0x5c   :  { %265 = vmatprep.mubr.bf16.mxu0 %v2577_v44 }
  0x5d   :  { %1501 = vmatmul.mubr.msk.bf16.gmra.mxu1 %vm165_vm1, %v83_v51 }
  0x5e   :  { %338 = vmatprep.mubr.bf16.mxu1 %v2577_v44 }
  0x63   :  { %1497 = vmatmul.mubr.msk.bf16.gmra.mxu0 %vm165_vm1, %v84_v54 }
  0x64   :  { %381 = vmatprep.mubr.bf16.mxu0 %v2577_v44 }
  0x65   :  { %1502 = vmatmul.mubr.msk.bf16.gmra.mxu1 %vm165_vm1, %v84_v54 }
  0x66   :  { %454 = vmatprep.mubr.bf16.mxu1 %v2577_v44 }
  0x6b   :  { %1504 = vmatmul.mubr.msk.bf16.vlgmr.msra.gmra.mxu0 %vm165_vm1, %v81_v58 }
  0x6c   :  { %391 = vmatprep.mubr.bf16.mxu0 %v2577_v44 }
  0x6d   :  { %1509 = vmatmul.mubr.msk.bf16.vlgmr.msra.gmra.mxu1 %vm165_vm1, %v81_v58  ;;  %v95_v58 = vsub.s32 1, %v2060_v49 }
  0x6e   :  { %464 = vmatprep.mubr.bf16.mxu1 %v2577_v44 }
  0x6f   :  { %v2184_v42 = vrot.slane %v2175_v56, %v95_v58 }
  0x73   :  { %1505 = vmatmul.mubr.msk.bf16.gmra.mxu0 %vm165_vm1, %v82_v46 }
  0x74   :  { %401 = vmatprep.mubr.bf16.mxu0 %v2577_v44 }
  0x75   :  { %1510 = vmatmul.mubr.msk.bf16.gmra.mxu1 %vm165_vm1, %v82_v46  ;;  %v2191_v46 = vrot.slane %v2175_v56, %v103_v41 }
  0x76   :  { %474 = vmatprep.mubr.bf16.mxu1 %v2577_v44 }
  0x7b   :  { %1506 = vmatmul.mubr.msk.bf16.gmra.mxu0 %vm165_vm1, %v83_v51 }
  0x7c   :  { %411 = vmatprep.mubr.bf16.mxu0 %v2577_v44 }
  0x7d   :  { %1511 = vmatmul.mubr.msk.bf16.gmra.mxu1 %vm165_vm1, %v83_v51 }
  0x7e   :  { %484 = vmatprep.mubr.bf16.mxu1 %v2577_v44  ;;  %v2187_v44 = vrot.slane %v2175_v56, %v99_v63 }
  0x83   :  { %1507 = vmatmul.mubr.msk.bf16.gmra.mxu0 %vm165_vm1, %v84_v54 }
  0x85   :  { %1512 = vmatmul.mubr.msk.bf16.gmra.mxu1 %vm165_vm1, %v84_v54 }
 0x10b   :  { %v237_v43 = vpop.f32.mrf.mxu0 }
 0x10c   :  { %v238_v45 = vadd.f32 %v237_v43, %v2180_v50 }
 0x10d   :  { %v239_v47 = vpop.f32.mrf.mxu0  ;;  %v310_v48 = vpop.f32.mrf.mxu1 }
 0x10e   :  { %495 = vst [vmem:[#allocation3] sm:$0xff] %v238_v45  ;;  %v240_v51 = vadd.f32 %v239_v47, %v2184_v42  ;;  %v311_v52 = vadd.f32 %v310_v48, %v2187_v44 }
 0x10f   :  { %v241_v53 = vpop.f32.mrf.mxu0  ;;  %v312_v54 = vpop.f32.mrf.mxu1 }
 0x110   :  { %496 = vst [vmem:[#allocation3 + $0x8] sm:$0xff] %v240_v51  ;;  %497 = vst [vmem:[#allocation3 + $0x10] sm:$0xff] %v311_v52  ;;  %v242_v55 = vadd.f32 %v241_v53, %v2180_v50  ;;  %v313_v58 = vadd.f32 %v312_v54, %v2191_v46 }
 0x111   :  { %v243_v63 = vpop.f32.mrf.mxu0  ;;  %v314_v43 = vpop.f32.mrf.mxu1 }
 0x112   :  { %503 = vst [vmem:[#allocation3 + $0x40] sm:$0xff] %v242_v55  ;;  %498 = vst [vmem:[#allocation3 + $0x18] sm:$0xff] %v313_v58  ;;  %v244_v41 = vadd.f32 %v243_v63, %v2184_v42  ;;  %v315_v45 = vadd.f32 %v314_v43, %v2187_v44 }
 0x113   :  { %v247_v57 = vpop.f32.mrf.mxu0  ;;  %v316_v47 = vpop.f32.mrf.mxu1 }
 0x114   :  { %504 = vst [vmem:[#allocation3 + $0x48] sm:$0xff] %v244_v41  ;;  %505 = vst [vmem:[#allocation3 + $0x50] sm:$0xff] %v315_v45  ;;  %v248_v48 = vadd.f32 %v247_v57, %v2180_v50  ;;  %v317_v51 = vadd.f32 %v316_v47, %v2191_v46 }
 0x115   :  { %v249_v52 = vpop.f32.mrf.mxu0  ;;  %v320_v53 = vpop.f32.mrf.mxu1 }
 0x116   :  { %511 = vst [vmem:[#allocation3 + $0x80] sm:$0xff] %v248_v48  ;;  %506 = vst [vmem:[#allocation3 + $0x58] sm:$0xff] %v317_v51  ;;  %v250_v54 = vadd.f32 %v249_v52, %v2184_v42  ;;  %v321_v55 = vadd.f32 %v320_v53, %v2187_v44 }
 0x117   :  { %v251_v58 = vpop.f32.mrf.mxu0  ;;  %v322_v63 = vpop.f32.mrf.mxu1 }
 0x118   :  { %512 = vst [vmem:[#allocation3 + $0x88] sm:$0xff] %v250_v54  ;;  %513 = vst [vmem:[#allocation3 + $0x90] sm:$0xff] %v321_v55  ;;  %v252_v43 = vadd.f32 %v251_v58, %v2180_v50  ;;  %v323_v41 = vadd.f32 %v322_v63, %v2191_v46 }
 0x119   :  { %v253_v45 = vpop.f32.mrf.mxu0  ;;  %v324_v57 = vpop.f32.mrf.mxu1 }
 0x11a   :  { %519 = vst [vmem:[#allocation3 + $0xc0] sm:$0xff] %v252_v43  ;;  %514 = vst [vmem:[#allocation3 + $0x98] sm:$0xff] %v323_v41  ;;  %v254_v47 = vadd.f32 %v253_v45, %v2184_v42  ;;  %v325_v48 = vadd.f32 %v324_v57, %v2187_v44 }
 0x11b   :  { %v257_v51 = vpop.f32.mrf.mxu0  ;;  %v326_v52 = vpop.f32.mrf.mxu1 }
 0x11c   :  { %520 = vst [vmem:[#allocation3 + $0xc8] sm:$0xff] %v254_v47  ;;  %521 = vst [vmem:[#allocation3 + $0xd0] sm:$0xff] %v325_v48  ;;  %v258_v53 = vadd.f32 %v257_v51, %v2180_v50  ;;  %v327_v54 = vadd.f32 %v326_v52, %v2191_v46 }
 0x11d   :  { %v259_v55 = vpop.f32.mrf.mxu0  ;;  %v330_v58 = vpop.f32.mrf.mxu1 }
 0x11e   :  { %527 = vst [vmem:[#allocation3 + $0x100] sm:$0xff] %v258_v53  ;;  %522 = vst [vmem:[#allocation3 + $0xd8] sm:$0xff] %v327_v54  ;;  %v260_v63 = vadd.f32 %v259_v55, %v2184_v42  ;;  %v331_v43 = vadd.f32 %v330_v58, %v2187_v44 }
 0x11f   :  { %v261_v41 = vpop.f32.mrf.mxu0  ;;  %v332_v45 = vpop.f32.mrf.mxu1 }
 0x120   :  { %528 = vst [vmem:[#allocation3 + $0x108] sm:$0xff] %v260_v63  ;;  %529 = vst [vmem:[#allocation3 + $0x110] sm:$0xff] %v331_v43  ;;  %v262_v57 = vadd.f32 %v261_v41, %v2180_v50  ;;  %v333_v47 = vadd.f32 %v332_v45, %v2191_v46  ;;  %v107_v43 = vsub.s32 4, %v2060_v49 }
 0x121   :  { %v263_v48 = vpop.f32.mrf.mxu0  ;;  %v334_v51 = vpop.f32.mrf.mxu1 }
 0x122   :  { %535 = vst [vmem:[#allocation3 + $0x140] sm:$0xff] %v262_v57  ;;  %530 = vst [vmem:[#allocation3 + $0x118] sm:$0xff] %v333_v47  ;;  %v264_v52 = vadd.f32 %v263_v48, %v2184_v42  ;;  %v335_v53 = vadd.f32 %v334_v51, %v2187_v44  ;;  %v111_v48 = vsub.s32 5, %v2060_v49  ;;  %v115_v51 = vsub.s32 6, %v2060_v49 }
 0x123   :  { %v267_v54 = vpop.f32.mrf.mxu0  ;;  %v336_v55 = vpop.f32.mrf.mxu1  ;;  %v2225_v60 = vrot.slane %v2175_v56, %v107_v43 }
 0x124   :  { %536 = vst [vmem:[#allocation3 + $0x148] sm:$0xff] %v264_v52  ;;  %537 = vst [vmem:[#allocation3 + $0x150] sm:$0xff] %v335_v53  ;;  %v268_v58 = vadd.f32 %v267_v54, %v2180_v50  ;;  %v337_v63 = vadd.f32 %v336_v55, %v2191_v46 }
 0x125   :  { %v269_v41 = vpop.f32.mrf.mxu0  ;;  %v340_v45 = vpop.f32.mrf.mxu1 }
 0x126   :  { %543 = vst [vmem:[#allocation3 + $0x180] sm:$0xff] %v268_v58  ;;  %538 = vst [vmem:[#allocation3 + $0x158] sm:$0xff] %v337_v63  ;;  %v270_v57 = vadd.f32 %v269_v41, %v2184_v42  ;;  %v341_v47 = vadd.f32 %v340_v45, %v2187_v44  ;;  %v119_v58 = vsub.s32 7, %v2060_v49 }
 0x127   :  { %v271_v52 = vpop.f32.mrf.mxu0  ;;  %v342_v53 = vpop.f32.mrf.mxu1 }
 0x128   :  { %544 = vst [vmem:[#allocation3 + $0x188] sm:$0xff] %v270_v57  ;;  %545 = vst [vmem:[#allocation3 + $0x190] sm:$0xff] %v341_v47  ;;  %v272_v54 = vadd.f32 %v271_v52, %v2180_v50  ;;  %v343_v55 = vadd.f32 %v342_v53, %v2191_v46  ;;  %v2231_v57 = vrot.slane %v2175_v56, %v111_v48 }
 0x129   :  { %v273_v63 = vpop.f32.mrf.mxu0  ;;  %v344_v41 = vpop.f32.mrf.mxu1  ;;  %v2234_v50 = vrot.slane %v2175_v56, %v115_v51  ;;  %v2239_v53 = vrot.slane %v2175_v56, %v119_v58 }
 0x12a   :  { %551 = vst [vmem:[#allocation3 + $0x1c0] sm:$0xff] %v272_v54  ;;  %546 = vst [vmem:[#allocation3 + $0x198] sm:$0xff] %v343_v55  ;;  %v274_v45 = vadd.f32 %v273_v63, %v2184_v42  ;;  %v345_v62 = vadd.f32 %v344_v41, %v2187_v44 }
 0x12b   :  { %v346_v47 = vpop.f32.mrf.mxu1  ;;  %v383_v52 = vpop.f32.mrf.mxu0 }
 0x12c   :  { %552 = vst [vmem:[#allocation3 + $0x1c8] sm:$0xff] %v274_v45  ;;  %553 = vst [vmem:[#allocation3 + $0x1d0] sm:$0xff] %v345_v62  ;;  %v347_v49 = vadd.f32 %v346_v47, %v2191_v46  ;;  %v384_v43 = vadd.f32 %v383_v52, %v2225_v60 }
 0x12d   :  { %v385_v42 = vpop.f32.mrf.mxu0  ;;  %v456_v54 = vpop.f32.mrf.mxu1 }
 0x12e   :  { %554 = vst [vmem:[#allocation3 + $0x1d8] sm:$0xff] %v347_v49  ;;  %499 = vst [vmem:[#allocation3 + $0x20] sm:$0xff] %v384_v43  ;;  %v386_v44 = vadd.f32 %v385_v42, %v2231_v57  ;;  %v457_v48 = vadd.f32 %v456_v54, %v2234_v50 }
 0x12f   :  { %v387_v51 = vpop.f32.mrf.mxu0  ;;  %v458_v55 = vpop.f32.mrf.mxu1 }
 0x130   :  { %500 = vst [vmem:[#allocation3 + $0x28] sm:$0xff] %v386_v44  ;;  %501 = vst [vmem:[#allocation3 + $0x30] sm:$0xff] %v457_v48  ;;  %v388_v62 = vadd.f32 %v387_v51, %v2225_v60  ;;  %v459_v46 = vadd.f32 %v458_v55, %v2239_v53 }
 0x131   :  { %v389_v63 = vpop.f32.mrf.mxu0  ;;  %v460_v41 = vpop.f32.mrf.mxu1 }
 0x132   :  { %507 = vst [vmem:[#allocation3 + $0x60] sm:$0xff] %v388_v62  ;;  %502 = vst [vmem:[#allocation3 + $0x38] sm:$0xff] %v459_v46  ;;  %v390_v56 = vadd.f32 %v389_v63, %v2231_v57  ;;  %v461_v58 = vadd.f32 %v460_v41, %v2234_v50 }
 0x133   :  { %v393_v45 = vpop.f32.mrf.mxu0  ;;  %v462_v47 = vpop.f32.mrf.mxu1 }
 0x134   :  { %508 = vst [vmem:[#allocation3 + $0x68] sm:$0xff] %v390_v56  ;;  %509 = vst [vmem:[#allocation3 + $0x70] sm:$0xff] %v461_v58  ;;  %v394_v52 = vadd.f32 %v393_v45, %v2225_v60  ;;  %v463_v49 = vadd.f32 %v462_v47, %v2239_v53 }
 0x135   :  { %v395_v43 = vpop.f32.mrf.mxu0  ;;  %v466_v42 = vpop.f32.mrf.mxu1 }
 0x136   :  { %515 = vst [vmem:[#allocation3 + $0xa0] sm:$0xff] %v394_v52  ;;  %510 = vst [vmem:[#allocation3 + $0x78] sm:$0xff] %v463_v49  ;;  %v396_v54 = vadd.f32 %v395_v43, %v2231_v57  ;;  %v467_v44 = vadd.f32 %v466_v42, %v2234_v50 }
 0x137   :  { %v397_v48 = vpop.f32.mrf.mxu0  ;;  %v468_v51 = vpop.f32.mrf.mxu1 }
 0x138   :  { %516 = vst [vmem:[#allocation3 + $0xa8] sm:$0xff] %v396_v54  ;;  %517 = vst [vmem:[#allocation3 + $0xb0] sm:$0xff] %v467_v44  ;;  %v398_v55 = vadd.f32 %v397_v48, %v2225_v60  ;;  %v469_v62 = vadd.f32 %v468_v51, %v2239_v53 }
 0x139   :  { %v399_v46 = vpop.f32.mrf.mxu0  ;;  %v470_v63 = vpop.f32.mrf.mxu1 }
 0x13a   :  { %523 = vst [vmem:[#allocation3 + $0xe0] sm:$0xff] %v398_v55  ;;  %518 = vst [vmem:[#allocation3 + $0xb8] sm:$0xff] %v469_v62  ;;  %v400_v41 = vadd.f32 %v399_v46, %v2231_v57  ;;  %v471_v56 = vadd.f32 %v470_v63, %v2234_v50 }
 0x13b   :  { %v403_v58 = vpop.f32.mrf.mxu0  ;;  %v472_v45 = vpop.f32.mrf.mxu1 }
 0x13c   :  { %524 = vst [vmem:[#allocation3 + $0xe8] sm:$0xff] %v400_v41  ;;  %525 = vst [vmem:[#allocation3 + $0xf0] sm:$0xff] %v471_v56  ;;  %v404_v47 = vadd.f32 %v403_v58, %v2225_v60  ;;  %v473_v52 = vadd.f32 %v472_v45, %v2239_v53 }
 0x13d   :  { %v405_v49 = vpop.f32.mrf.mxu0  ;;  %v476_v43 = vpop.f32.mrf.mxu1 }
 0x13e   :  { %531 = vst [vmem:[#allocation3 + $0x120] sm:$0xff] %v404_v47  ;;  %526 = vst [vmem:[#allocation3 + $0xf8] sm:$0xff] %v473_v52  ;;  %v406_v42 = vadd.f32 %v405_v49, %v2231_v57  ;;  %v477_v54 = vadd.f32 %v476_v43, %v2234_v50 }
 0x13f   :  { %v407_v44 = vpop.f32.mrf.mxu0  ;;  %v478_v48 = vpop.f32.mrf.mxu1 }
 0x140   :  { %532 = vst [vmem:[#allocation3 + $0x128] sm:$0xff] %v406_v42  ;;  %533 = vst [vmem:[#allocation3 + $0x130] sm:$0xff] %v477_v54  ;;  %v408_v51 = vadd.f32 %v407_v44, %v2225_v60  ;;  %v479_v55 = vadd.f32 %v478_v48, %v2239_v53 }
 0x141   :  { %v409_v62 = vpop.f32.mrf.mxu0  ;;  %v480_v46 = vpop.f32.mrf.mxu1 }
 0x142   :  { %539 = vst [vmem:[#allocation3 + $0x160] sm:$0xff] %v408_v51  ;;  %534 = vst [vmem:[#allocation3 + $0x138] sm:$0xff] %v479_v55  ;;  %v410_v63 = vadd.f32 %v409_v62, %v2231_v57  ;;  %v481_v41 = vadd.f32 %v480_v46, %v2234_v50 }
 0x143   :  { %v413_v56 = vpop.f32.mrf.mxu0  ;;  %v482_v58 = vpop.f32.mrf.mxu1 }
 0x144   :  { %540 = vst [vmem:[#allocation3 + $0x168] sm:$0xff] %v410_v63  ;;  %541 = vst [vmem:[#allocation3 + $0x170] sm:$0xff] %v481_v41  ;;  %v414_v45 = vadd.f32 %v413_v56, %v2225_v60  ;;  %v483_v47 = vadd.f32 %v482_v58, %v2239_v53  ;;  %v2272_v58 = vmov 0.0  }
 0x145   :  { %v415_v52 = vpop.f32.mrf.mxu0  ;;  %v486_v49 = vpop.f32.mrf.mxu1 }
 0x146   :  { %547 = vst [vmem:[#allocation3 + $0x1a0] sm:$0xff] %v414_v45  ;;  %542 = vst [vmem:[#allocation3 + $0x178] sm:$0xff] %v483_v47  ;;  %v416_v43 = vadd.f32 %v415_v52, %v2231_v57  ;;  %v487_v42 = vadd.f32 %v486_v49, %v2234_v50  ;;  %v2274_v45 = vmov 0.0   ;;  %v2278_v47 = vmov 0.0  }
 0x147   :  { %v417_v54 = vpop.f32.mrf.mxu0  ;;  %v488_v44 = vpop.f32.mrf.mxu1 }
 0x148   :  { %548 = vst [vmem:[#allocation3 + $0x1a8] sm:$0xff] %v416_v43  ;;  %549 = vst [vmem:[#allocation3 + $0x1b0] sm:$0xff] %v487_v42  ;;  %v418_v48 = vadd.f32 %v417_v54, %v2225_v60  ;;  %v489_v51 = vadd.f32 %v488_v44, %v2239_v53  ;;  %v2276_v60 = vmov 0.0  }
 0x149   :  { %v419_v55 = vpop.f32.mrf.mxu0  ;;  %v490_v62 = vpop.f32.mrf.mxu1 }
 0x14a   :  { %555 = vst [vmem:[#allocation3 + $0x1e0] sm:$0xff] %v418_v48  ;;  %550 = vst [vmem:[#allocation3 + $0x1b8] sm:$0xff] %v489_v51  ;;  %v420_v46 = vadd.f32 %v419_v55, %v2231_v57  ;;  %v491_v63 = vadd.f32 %v490_v62, %v2234_v50 }
 0x14b   :  { %v492_v41 = vpop.f32.mrf.mxu1 }
 0x14c   :  { %556 = vst [vmem:[#allocation3 + $0x1e8] sm:$0xff] %v420_v46  ;;  %557 = vst [vmem:[#allocation3 + $0x1f0] sm:$0xff] %v491_v63  ;;  %v493_v56 = vadd.f32 %v492_v41, %v2239_v53 }
 0x14e   :  { %558 = vst [vmem:[#allocation3 + $0x1f8] sm:$0xff] %v493_v56 }
 0x14f LB: > { %v2578_v17 = vld [vmem:[#allocation30_spill] sm:$0xff]  ;;  %v2579_v16 = vld [vmem:[#allocation29_spill] sm:$0xff]  ;;  %v2580_v15 = vld [vmem:[#allocation28_spill] sm:$0xff]  ;;  %v1546_v57 = vcombine.high %v2028_v30, %v2032_v32  ;;  %v1545_v50 = vcombine.low %v2028_v30, %v2032_v32  ;;  %v1542_v53 = vcombine.high %v2020_v26, %v2024_v28  ;;  %v1548_v52 = vcombine.high %v2030_v31, %v2034_v33  ;;  %s2339_s4 = ssub.s32 7, %s1896_s5  ;;  %s1608_s20 = sshll.u32 %s1896_s5, 6  ;;  %v1888_v60 = vphi %v2276_v60, %v1215_v60   ;;  %v1884_v45 = vphi %v2274_v45, %v1216_v45   ;;  %v1880_v58 = vphi %v2272_v58, %v1217_v58   ;;  %s1896_s5 = sphi %s2280_s5, %s628_s5   ;;  %v1892_v47 = vphi %v2278_v47, %v1214_v47  }
 0x150   : > { %v2581_v14 = vld [vmem:[#allocation27_spill] sm:$0xff]  ;;  %v2582_v13 = vld [vmem:[#allocation26_spill] sm:$0xff]  ;;  %v2583_v12 = vld [vmem:[#allocation25_spill] sm:$0xff]  ;;  %v1547_v49 = vcombine.low %v2030_v31, %v2034_v33  ;;  %v1544_v43 = vcombine.high %v2022_v27, %v2026_v29  ;;  %v1541_v42 = vcombine.low %v2020_v26, %v2024_v28  ;;  %v1538_v54 = vcombine.high %v2012_v22, %v2016_v24  ;;  %s636_s21 = scalar_lea.vmem [#allocation3], %s1608_s20  ;;  %s1609_s22 = sshll.u32 %s2339_s4, 6 }
 0x151   : > { %v2584_v11 = vld [vmem:[#allocation24_spill] sm:$0xff]  ;;  %v2585_v10 = vld [vmem:[#allocation23_spill] sm:$0xff]  ;;  %v2586_v9 = vld [vmem:[#allocation22_spill] sm:$0xff]  ;;  %809 = vmatprep.subr.bf16.mxu0 %v1546_v57  ;;  %850 = vmatprep.subr.bf16.mxu1 %v1548_v52  ;;  %v1543_v44 = vcombine.low %v2022_v27, %v2026_v29  ;;  %v1540_v48 = vcombine.high %v2014_v23, %v2018_v25  ;;  %v1907_v51 = vmov 0   ;;  %v1537_v55 = vcombine.low %v2012_v22, %v2016_v24  ;;  %s2445_s3 = scalar_lea.vmem [#allocation3], %s1609_s22  ;;  %s1610_s23 = sshll.u32 %s1896_s5, 4 }
 0x152   : > { %v2587_v8 = vld [vmem:[#allocation21_spill] sm:$0xff]  ;;  %v2588_v7 = vld [vmem:[#allocation20_spill] sm:$0xff]  ;;  %v2589_v6 = vld [vmem:[#allocation19_spill] sm:$0xff]  ;;  %810 = vmatpush1.bf16.msra.mxu0 %v1545_v50  ;;  %851 = vmatpush1.bf16.msra.mxu1 %v1547_v49  ;;  %v1534_v62 = vcombine.high %v2004_v18, %v2008_v20  ;;  %v1539_v46 = vcombine.low %v2014_v23, %v2018_v25  ;;  %v1536_v63 = vcombine.high %v2006_v19, %v2010_v21  ;;  %s1202_s0 = scalar_lea.vmem [#allocation2], %s1610_s23  ;;  %s1611_s6 = sshll.u32 %s2339_s4, 4 }
 0x153   : > { %v2590_v5 = vld [vmem:[#allocation18_spill] sm:$0xff]  ;;  %v2591_v4 = vld [vmem:[#allocation17_spill] sm:$0xff]  ;;  %v2592_v3 = vld [vmem:[#allocation16_spill] sm:$0xff]  ;;  %811 = vmatprep.subr.bf16.mxu0 %v1542_v53  ;;  %852 = vmatprep.subr.bf16.mxu1 %v1544_v43  ;;  %v1533_v41 = vcombine.low %v2004_v18, %v2008_v20  ;;  %v1530_v56 = vcombine.high %v2581_v14, %v2579_v16  ;;  %v1535_v57 = vcombine.low %v2006_v19, %v2010_v21  ;;  %v1190_v43 = vstv %s1896_s5  ;;  %s1212_s24 = scalar_lea.vmem [#allocation2], %s1611_s6  ;;  %s628_s5 = sadd.s32 1, %s1896_s5  }
 0x154   : > { %v2593_v2 = vld [vmem:[#allocation15_spill] sm:$0xff]  ;;  %v2594_v1 = vld [vmem:[#allocation14_spill] sm:$0xff]  ;;  %v2595_v0 = vld [vmem:[#allocation53_spill] sm:$0xff]  ;;  %841 = vmatprep.mubr.bf16.mxu0 %v1907_v51  ;;  %882 = vmatprep.mubr.bf16.mxu1 %v1907_v51  ;;  %v1532_v50 = vcombine.high %v2580_v15, %v2578_v17  ;;  %v1529_v53 = vcombine.low %v2581_v14, %v2579_v16  ;;  %v1526_v52 = vcombine.high %v2585_v10, %v2583_v12  ;;  %p625_p1 = scmp.ge.s32.totalorder %s628_s5, 8  }
 0x155   : > { %1723 = vset.pattern.permute.xlu0 %v1907_v51  ;;  %v1531_v49 = vcombine.low %v2580_v15, %v2578_v17  ;;  %vm1191_vm2 = vcmp.lt.s32.totalorder %v1190_v43, %v2594_v1  ;;  %v1583_v43 = vcombine.high %v2097_v40, %v2101_v39  ;;  %v639_v14 = vld [vmem:[%s636_s21 + $0x10] sm:$0xff]  ;;  %v1764_v18 = vld [vmem:[#allocation9 + $0x58] sm:$0xff] (%p625_p1)   ;;  %v1768_v28 = vld [vmem:[#allocation9 + $0x48] sm:$0xff] (%p625_p1)  }
 0x156   : > { %812 = vmatpush1.bf16.msra.mxu0 %v1541_v42  ;;  %853 = vmatpush1.bf16.msra.mxu1 %v1543_v44  ;;  %v1528_v42 = vcombine.high %v2584_v11, %v2582_v13  ;;  %v1525_v44 = vcombine.low %v2585_v10, %v2583_v12  ;;  %v1765_v19 = vld [vmem:[#allocation9 + $0x18] sm:$0xff] (%p625_p1)   ;;  %v1766_v20 = vld [vmem:[#allocation9 + $0x50] sm:$0xff] (%p625_p1)   ;;  %v1769_v29 = vld [vmem:[#allocation9 + $0x8] sm:$0xff] (%p625_p1)  }
 0x157   : > { %813 = vmatprep.subr.bf16.mxu0 %v1538_v54  ;;  %854 = vmatprep.subr.bf16.mxu1 %v1540_v48  ;;  %v1192_v54 = vstv %s2339_s4  ;;  %v1194_v48 = vsel %vm1191_vm2, 1, %v1907_v51  ;;  %v1767_v27 = vld [vmem:[#allocation9 + $0x10] sm:$0xff] (%p625_p1)   ;;  %v1770_v30 = vld [vmem:[#allocation9 + $0x40] sm:$0xff] (%p625_p1)  }
 0x158   : > { %vm1193_vm3 = vcmp.lt.s32.totalorder %v1192_v54, %v2594_v1  ;;  %1196 = vperm.xlu0 %1723, %v1194_v48   ;;  %v1580_v54 = vcombine.low %v2095_v38, %v2099_v37  ;;  %v1582_v48 = vcombine.low %v2097_v40, %v2101_v39  ;;  %v1771_v31 = vld [vmem:[#allocation9] sm:$0xff] (%p625_p1)  }
 0x15a   : > { %814 = vmatpush1.bf16.msra.mxu0 %v1537_v55  ;;  %855 = vmatpush1.bf16.msra.mxu1 %v1539_v46  ;;  %v1522_v55 = vcombine.high %v2589_v6, %v2587_v8  ;;  %v1524_v46 = vcombine.high %v2588_v7, %v2586_v9 }
 0x15b   : > { %815 = vmatprep.subr.bf16.mxu0 %v1534_v62  ;;  %856 = vmatprep.subr.bf16.mxu1 %v1536_v63  ;;  %v1527_v62 = vcombine.low %v2584_v11, %v2582_v13  ;;  %v1204_v63 = vsel %vm1193_vm3, 1, %v1907_v51 }
 0x15c   : > { %1206 = vperm.xlu0 %1723, %v1204_v63   ;;  %v1578_v63 = vcombine.low %v2089_v35, %v2595_v0 }
 0x15e   : > { %816 = vmatpush1.bf16.msra.mxu0 %v1533_v41  ;;  %857 = vmatpush1.bf16.msra.mxu1 %v1535_v57  ;;  %v1521_v41 = vcombine.low %v2589_v6, %v2587_v8  ;;  %v1523_v57 = vcombine.low %v2588_v7, %v2586_v9  ;;  %v2611_v6 = vld [vmem:[#allocation35_spill] sm:$0xff]  ;;  %v2613_v8 = vld [vmem:[#allocation36_spill] sm:$0xff] }
 0x15f   : > { %817 = vmatprep.subr.bf16.mxu0 %v1530_v56  ;;  %858 = vmatprep.subr.bf16.mxu1 %v1532_v50  ;;  %v1518_v56 = vcombine.high %v2593_v2, %v2591_v4  ;;  %v1520_v50 = vcombine.high %v2592_v3, %v2590_v5  ;;  %v2615_v9 = vld [vmem:[#allocation31_spill] sm:$0xff] }
 0x162   : > { %818 = vmatpush1.bf16.msra.mxu0 %v1529_v53  ;;  %859 = vmatpush1.bf16.msra.mxu1 %v1531_v49  ;;  %v1517_v53 = vcombine.low %v2593_v2, %v2591_v4  ;;  %v1519_v49 = vcombine.low %v2592_v3, %v2590_v5  ;;  %v2607_v2 = vld [vmem:[#allocation39_spill] sm:$0xff]  ;;  %v2609_v4 = vld [vmem:[#allocation40_spill] sm:$0xff] }
 0x163   : > { %819 = vmatprep.subr.bf16.mxu0 %v1526_v52  ;;  %860 = vmatprep.subr.bf16.mxu1 %v1528_v42  ;;  %v1581_v52 = vcombine.high %v2095_v38, %v2099_v37  ;;  %v648_v42 = vpack.c.bf16 %v1892_v47, %v1892_v47 }
 0x166   : > { %820 = vmatpush1.bf16.msra.mxu0 %v1525_v44  ;;  %861 = vmatpush1.bf16.msra.mxu1 %v1527_v62  ;;  %v1577_v44 = vcombine.high %v2087_v34, %v2091_v36  ;;  %v1576_v62 = vcombine.low %v2087_v34, %v2091_v36 }
 0x167   : > { %821 = vmatprep.subr.bf16.mxu0 %v1522_v55  ;;  %862 = vmatprep.subr.bf16.mxu1 %v1524_v46  ;;  %v1579_v55 = vcombine.high %v2089_v35, %v2595_v0  ;;  %v1573_v46 = vcombine.high %v2078_v59, %v2082_v61  ;;  %v2605_v0 = vld [vmem:[#allocation44_spill] sm:$0xff] }
 0x16a   : > { %822 = vmatpush1.bf16.msra.mxu0 %v1521_v41  ;;  %863 = vmatpush1.bf16.msra.mxu1 %v1523_v57  ;;  %v2596_v41 = vld [vmem:[#allocation52_spill] sm:$0xff] }
 0x16b   : > { %823 = vmatprep.subr.bf16.mxu0 %v1518_v56  ;;  %864 = vmatprep.subr.bf16.mxu1 %v1520_v50  ;;  %v2597_v56 = vld [vmem:[#allocation51_spill] sm:$0xff]  ;;  %v1572_v50 = vcombine.low %v2078_v59, %v2082_v61 }
 0x16c   : > { %v1575_v57 = vcombine.high %v2597_v56, %v2596_v41 }
 0x16e   : > { %824 = vmatpush1.bf16.msra.mxu0 %v1517_v53  ;;  %865 = vmatpush1.bf16.msra.mxu1 %v1519_v49  ;;  %v2598_v53 = vld [vmem:[#allocation49_spill] sm:$0xff] }
 0x16f   : > { %1080 = vmatprep.subr.bf16.mxu0 %v1581_v52  ;;  %1121 = vmatprep.subr.bf16.mxu1 %v1583_v43  ;;  %v2599_v52 = vld [vmem:[#allocation47_spill] sm:$0xff]  ;;  %v1574_v43 = vcombine.low %v2597_v56, %v2596_v41 }
 0x170   : > { %v1569_v49 = vcombine.high %v2599_v52, %v2598_v53 }
 0x171   : > { %842 = vmatmul.mubr.bf16.vlgmr.msra.gmra.mxu0 %v648_v42  ;;  %883 = vmatmul.mubr.bf16.vlgmr.msra.gmra.mxu1 %v648_v42  ;;  %v2600_v42 = vld [vmem:[#allocation50_spill] sm:$0xff] }
 0x172   : > { %1081 = vmatpush1.bf16.msra.mxu0 %v1580_v54  ;;  %1122 = vmatpush1.bf16.msra.mxu1 %v1582_v48  ;;  %v2601_v54 = vld [vmem:[#allocation48_spill] sm:$0xff]  ;;  %v2602_v48 = vld [vmem:[#allocation45_spill] sm:$0xff] }
 0x173   : > { %1082 = vmatprep.subr.bf16.mxu0 %v1577_v44  ;;  %1123 = vmatprep.subr.bf16.mxu1 %v1579_v55  ;;  %v1571_v44 = vcombine.high %v2601_v54, %v2600_v42  ;;  %v2603_v55 = vld [vmem:[#allocation43_spill] sm:$0xff] }
 0x174   : > { %1112 = vmatprep.mubr.bf16.mxu0 %v1907_v51  ;;  %1153 = vmatprep.mubr.bf16.mxu1 %v1907_v51  ;;  %v1568_v51 = vcombine.low %v2599_v52, %v2598_v53 }
 0x176   : > { %1083 = vmatpush1.bf16.msra.mxu0 %v1576_v62  ;;  %1124 = vmatpush1.bf16.msra.mxu1 %v1578_v63  ;;  %v1565_v62 = vcombine.high %v2603_v55, %v2602_v48  ;;  %v2604_v63 = vld [vmem:[#allocation46_spill] sm:$0xff] }
 0x177   : > { %1084 = vmatprep.subr.bf16.mxu0 %v1573_v46  ;;  %1125 = vmatprep.subr.bf16.mxu1 %v1575_v57  ;;  %v1570_v46 = vcombine.low %v2601_v54, %v2600_v42  ;;  %v1567_v1 = vcombine.high %v2605_v0, %v2604_v63  ;;  %v1564_v57 = vcombine.low %v2603_v55, %v2602_v48  ;;  %v1591_v48 = vld [vmem:[%s2486_s7] ss:$0 sm:$0xff] (%p625_p1)  ;;  %s1908_s7 = smov (%p625_p1), [#allocation10]  }
 0x178   :  { %s1455_s27 = sshll.u32 (%p625_p1), %s1908_s7, 4  ;;  %s1456_s27 = int_to_ptr.vmem [resolvable:$true] %s1455_s27 }
 0x179   :  { %s1832_s28 = scalar_lea.vmem (%p625_p1), %s1456_s27, 1024  ;;  %p1837_p3 = scmp.lt.s32.totalorder (%p625_p1), %s1456_s27, %s1456_s27 }
 0x17a   : > { %1085 = vmatpush1.bf16.msra.mxu0 %v1572_v50  ;;  %1126 = vmatpush1.bf16.msra.mxu1 %v1574_v43  ;;  %v2606_v50 = vld [vmem:[#allocation41_spill] sm:$0xff]  ;;  %v2608_v43 = vld [vmem:[#allocation42_spill] sm:$0xff]  ;;  %p1833_p2 = scmp.ne.s32.totalorder (%p625_p1), %s1456_s27, %s1832_s28  ;;  %p1838_p4 = scmp.lt.s32.totalorder (%p625_p1), %s1832_s28, %s1832_s28 }
 0x17b   : > { %1086 = vmatprep.subr.bf16.mxu0 %v1569_v49  ;;  %1127 = vmatprep.subr.bf16.mxu1 %v1571_v44  ;;  %v1561_v3 = vcombine.high %v2607_v2, %v2606_v50  ;;  %v1566_v49 = vcombine.low %v2605_v0, %v2604_v63  ;;  %v1563_v5 = vcombine.high %v2609_v4, %v2608_v43 }
 0x17c   : > { %v1560_v44 = vcombine.low %v2607_v2, %v2606_v50  ;;  %p1839_p5 = por (%p625_p1), %p1838_p4, %p1837_p3 }
 0x17e   : > { %1087 = vmatpush1.bf16.msra.mxu0 %v1568_v51  ;;  %1128 = vmatpush1.bf16.msra.mxu1 %v1570_v46  ;;  %v2610_v51 = vld [vmem:[#allocation37_spill] sm:$0xff]  ;;  %v2612_v46 = vld [vmem:[#allocation38_spill] sm:$0xff]  ;;  %p1840_p6 = pnand (%p625_p1), %p1839_p5, %p1833_p2 }
 0x17f   : > { %1088 = vmatprep.subr.bf16.mxu0 %v1565_v62  ;;  %1129 = vmatprep.subr.bf16.mxu1 %v1567_v1  ;;  %v1557_v7 = vcombine.high %v2611_v6, %v2610_v51  ;;  %v1562_v62 = vcombine.low %v2609_v4, %v2608_v43  ;;  %v1559_v0 = vcombine.high %v2613_v8, %v2612_v46  ;;  %v2617_v4 = vld [vmem:[#allocation32_spill] sm:$0xff] }
 0x180   : > { %v1556_v1 = vcombine.low %v2611_v6, %v2610_v51  ;;  %v638_v6 = vld [vmem:[%s636_s21 + $0x8] sm:$0xff] }
 0x182   : > { %1089 = vmatpush1.bf16.msra.mxu0 %v1564_v57  ;;  %1130 = vmatpush1.bf16.msra.mxu1 %v1566_v49  ;;  %v2614_v57 = vld [vmem:[#allocation33_spill] sm:$0xff]  ;;  %v2616_v49 = vld [vmem:[#allocation34_spill] sm:$0xff] }
 0x183   : > { %1090 = vmatprep.subr.bf16.mxu0 %v1561_v3  ;;  %1131 = vmatprep.subr.bf16.mxu1 %v1563_v5  ;;  %v1553_v2 = vcombine.high %v2615_v9, %v2614_v57  ;;  %v1558_v3 = vcombine.low %v2613_v8, %v2612_v46  ;;  %v1555_v5 = vcombine.high %v2617_v4, %v2616_v49 }
 0x186   : > { %1091 = vmatpush1.bf16.msra.mxu0 %v1560_v44  ;;  %1132 = vmatpush1.bf16.msra.mxu1 %v1562_v62  ;;  %v1552_v44 = vcombine.low %v2615_v9, %v2614_v57  ;;  %v919_v62 = vpack.c.bf16 %v1884_v45, %v1884_v45 }
 0x187   : > { %1092 = vmatprep.subr.bf16.mxu0 %v1557_v7  ;;  %1133 = vmatprep.subr.bf16.mxu1 %v1559_v0  ;;  %v1554_v7 = vcombine.low %v2617_v4, %v2616_v49  ;;  %v637_v0 = vld [vmem:[%s636_s21] sm:$0xff] }
 0x18a   : > { %1093 = vmatpush1.bf16.msra.mxu0 %v1556_v1  ;;  %1134 = vmatpush1.bf16.msra.mxu1 %v1558_v3 }
 0x18b   : > { %1094 = vmatprep.subr.bf16.mxu0 %v1553_v2  ;;  %1135 = vmatprep.subr.bf16.mxu1 %v1555_v5 }
 0x18e   : > { %1095 = vmatpush1.bf16.msra.mxu0 %v1552_v44  ;;  %1136 = vmatpush1.bf16.msra.mxu1 %v1554_v7  ;;  %v640_v44 = vld [vmem:[%s636_s21 + $0x18] sm:$0xff] }
 0x191   : > { %1113 = vmatmul.mubr.bf16.vlgmr.msra.gmra.mxu0 %v919_v62  ;;  %1154 = vmatmul.mubr.bf16.vlgmr.msra.gmra.mxu1 %v919_v62 }
 0x231   : > { %v843_v1 = vpop.f32.mrf.mxu0  ;;  %v884_v9 = vpop.f32.mrf.mxu1 }
 0x232   : > { %v891_v8 = vadd.f32 %v843_v1, %v637_v0  ;;  %v893_v16 = vadd.f32 %v884_v9, %v639_v14 }
 0x233   : > { %v845_v2 = vpop.f32.mrf.mxu0  ;;  %v886_v11 = vpop.f32.mrf.mxu1 }
 0x234   : > { %v1549_v3 = vmul.f32 -1.442695, %v891_v8  ;;  %v892_v10 = vadd.f32 %v845_v2, %v638_v6  ;;  %v894_v62 = vadd.f32 %v886_v11, %v640_v44 }
 0x235   : > { %v847_v4 = vpop.f32.mrf.mxu0  ;;  %v888_v12 = vpop.f32.mrf.mxu1 }
 0x236   : > { %1724 = vpow2.f32 %v1549_v3  ;;  %v1550_v5 = vmul.f32 -1.442695, %v892_v10  ;;  %v1551_v15 = vmul.f32 -1.442695, %v894_v62  ;;  %v644_v4 = vld [vmem:[%s2445_s3 + $0x20] sm:$0xff]  ;;  %v1197_v3 = vpop.permute.xlu0 %1196 }
 0x237   : > { %v848_v13 = vpop.f32.mrf.mxu0  ;;  %v889_v7 = vpop.f32.mrf.mxu1  ;;  %vm1198_vm4 = vcmp.eq.s32.totalorder %v1197_v3, 1 }
 0x238   : > { %1726 = vpow2.f32 %v1550_v5  ;;  %v645_v13 = vld [vmem:[%s2445_s3 + $0x28] sm:$0xff] }
 0x239   : > { %1728 = vpow2.f32 %v1551_v15 }
 0x23a   : > { %1730 = vtanh.f32 %v893_v16 }
 0x243   : > { %v1725_v17 = vpop.eup %1724 }
 0x244   : > { %v898_v0 = vadd.f32 1.0, %v1725_v17 }
 0x245   : > { %v1727_v8 = vpop.eup %1726 }
 0x246   : > { %1732 = vrcp.f32 %v898_v0  ;;  %v904_v6 = vadd.f32 1.0, %v1727_v8  ;;  %v1729_v10 = vpop.eup %1728 }
 0x247   : > { %v1731_v12 = vpop.eup %1730  ;;  %v911_v15 = vadd.f32 1.0, %v1729_v10 }
 0x248   : > { %1734 = vrcp.f32 %v904_v6 }
 0x251   : > { %v1114_v11 = vpop.f32.mrf.mxu0  ;;  %v1155_v9 = vpop.f32.mrf.mxu1 }
 0x252   : > { %v1162_v1 = vadd.f32 %v1114_v11, %v644_v4 }
 0x253   : > { %v1733_v14 = vpop.eup %1732  ;;  %v1116_v17 = vpop.f32.mrf.mxu0 }
 0x254   : > { %v1584_v16 = vmul.f32 -1.442695, %v1162_v1  ;;  %v1163_v2 = vadd.f32 %v1116_v17, %v645_v13  ;;  %v915_v5 = vmul.f32 %v1733_v14, %v1731_v12  ;;  %v1157_v44 = vpop.f32.mrf.mxu1  ;;  %v647_v12 = vld [vmem:[%s2445_s3 + $0x38] sm:$0xff]  ;;  %v646_v13 = vld [vmem:[%s2445_s3 + $0x30] sm:$0xff] }
 0x255   : > { %v1735_v7 = vpop.eup %1734  ;;  %v1118_v62 = vpop.f32.mrf.mxu0  ;;  %v1165_v1 = vadd.f32 %v1157_v44, %v647_v12  ;;  %v1164_v14 = vadd.f32 %v1155_v9, %v646_v13 }
 0x256   : > { %1736 = vpow2.f32 %v1584_v16  ;;  %v1585_v0 = vmul.f32 -1.442695, %v1163_v2  ;;  %v914_v8 = vmul.f32 %v1888_v60, %v1735_v7  ;;  %v1159_v6 = vpop.f32.mrf.mxu1 }
 0x257   : > { %1738 = vrcp.f32 %v911_v15  ;;  %v1119_v4 = vpop.f32.mrf.mxu0  ;;  %v1586_v17 = vmul.f32 -1.442695, %v1165_v1 }
 0x258   : > { %1740 = vpow2.f32 %v1585_v0  ;;  %v916_v10 = vadd.f32 %v915_v5, %v914_v8  ;;  %v1160_v11 = vpop.f32.mrf.mxu1  ;;  %v1207_v4 = vpop.permute.xlu0 %1206 }
 0x259   : > { %vm1208_vm5 = vcmp.eq.s32.totalorder %v1207_v4, 1 }
 0x25a   : > { %1742 = vtanh.f32 %v916_v10  ;;  %v1215_v60 = vsel %vm1198_vm4, %v916_v10, %v1888_v60  }
 0x25b   : > { %1744 = vtanh.f32 %v1164_v14 }
 0x25c   : > { %1746 = vpow2.f32 %v1586_v17 }
 0x263   : > { %v1737_v16 = vpop.eup %1736 }
 0x264   : > { %v1739_v2 = vpop.eup %1738  ;;  %v1169_v7 = vadd.f32 1.0, %v1737_v16 }
 0x265   : > { %v1741_v15 = vpop.eup %1740 }
 0x266   : > { %1748 = vrcp.f32 %v1169_v7  ;;  %v1175_v62 = vadd.f32 1.0, %v1741_v15  ;;  %v1757_v7 = vld [vmem:[#allocation9 + $0x38] sm:$0xff] (%p625_p1)   ;;  %v1758_v15 = vld [vmem:[#allocation9 + $0x70] sm:$0xff] (%p625_p1)  }
 0x267   : > { %v1743_v5 = vpop.eup %1742 }
 0x268   : > { %1750 = vrcp.f32 %v1175_v62  ;;  %v918_v0 = vmul.f32 %v1743_v5, %v1739_v2  ;;  %v1745_v9 = vpop.eup %1744  ;;  %v1756_v2 = vld [vmem:[#allocation9 + $0x78] sm:$0xff] (%p625_p1)   ;;  %v1759_v62 = vld [vmem:[#allocation9 + $0x30] sm:$0xff] (%p625_p1)   ;;  %v1760_v5 = vld [vmem:[#allocation9 + $0x68] sm:$0xff] (%p625_p1)  }
 0x269   : > { %v1747_v44 = vpop.eup %1746  ;;  %1612 = vmatprep.subr.bf16.mxu0 (%p625_p1), %v1756_v2  ;;  %1652 = vmatprep.subr.bf16.mxu1 (%p625_p1), %v1756_v2 }
 0x26a   : > { %v1199_v8 = vsel %vm1198_vm4, %v918_v0, 0.0  ;;  %v1214_v47 = vsel %vm1198_vm4, %v918_v0, %v1892_v47   ;;  %v1182_v11 = vadd.f32 1.0, %v1747_v44  ;;  %1613 = vmatpush3.bf16.msra.mxu0 (%p625_p1), %v1757_v7  ;;  %1660 = vmatpush3.bf16.msra.mxu1 (%p625_p1), %v1757_v7  ;;  %v1761_v0 = vld [vmem:[#allocation9 + $0x28] sm:$0xff] (%p625_p1)  }
 0x26b   : > { %1203 = vst [vmem:[%s1202_s0] sm:$0xff] %v1199_v8  ;;  %1614 = vmatprep.subr.bf16.mxu0 (%p625_p1), %v1758_v15  ;;  %1653 = vmatprep.subr.bf16.mxu1 (%p625_p1), %v1758_v15  ;;  %v1762_v47 = vld [vmem:[#allocation9 + $0x60] sm:$0xff] (%p625_p1)  }
 0x26c   : > { %1752 = vrcp.f32 %v1182_v11  ;;  %v1763_v8 = vld [vmem:[#allocation9 + $0x20] sm:$0xff] (%p625_p1)  }
 0x26e   :  { %1615 = vmatpush3.bf16.msra.mxu0 (%p625_p1), %v1759_v62  ;;  %1661 = vmatpush3.bf16.msra.mxu1 (%p625_p1), %v1759_v62 }
 0x26f   :  { %1616 = vmatprep.subr.bf16.mxu0 (%p625_p1), %v1760_v5  ;;  %1654 = vmatprep.subr.bf16.mxu1 (%p625_p1), %v1760_v5 }
 0x272   :  { %1617 = vmatpush3.bf16.msra.mxu0 (%p625_p1), %v1761_v0  ;;  %1662 = vmatpush3.bf16.msra.mxu1 (%p625_p1), %v1761_v0 }
 0x273   : > { %v1749_v6 = vpop.eup %1748  ;;  %1618 = vmatprep.subr.bf16.mxu0 (%p625_p1), %v1762_v47  ;;  %1655 = vmatprep.subr.bf16.mxu1 (%p625_p1), %v1762_v47 }
 0x274   : > { %v1186_v13 = vmul.f32 %v1749_v6, %v1745_v9 }
 0x275   : > { %v1751_v10 = vpop.eup %1750 }
 0x276   : > { %v1185_v12 = vmul.f32 %v1880_v58, %v1751_v10  ;;  %1619 = vmatpush3.bf16.msra.mxu0 (%p625_p1), %v1763_v8  ;;  %1663 = vmatpush3.bf16.msra.mxu1 (%p625_p1), %v1763_v8 }
 0x277   :  { %1620 = vmatprep.subr.bf16.mxu0 (%p625_p1), %v1764_v18  ;;  %1656 = vmatprep.subr.bf16.mxu1 (%p625_p1), %v1764_v18 }
 0x278   : > { %v1187_v1 = vadd.f32 %v1186_v13, %v1185_v12 }
 0x279   : > { %v1753_v3 = vpop.eup %1752 }
 0x27a   : > { %1754 = vtanh.f32 %v1187_v1  ;;  %v1217_v58 = vsel %vm1208_vm5, %v1187_v1, %v1880_v58   ;;  %1621 = vmatpush3.bf16.msra.mxu0 (%p625_p1), %v1765_v19  ;;  %1664 = vmatpush3.bf16.msra.mxu1 (%p625_p1), %v1765_v19 }
 0x27b   :  { %1622 = vmatprep.subr.bf16.mxu0 (%p625_p1), %v1766_v20  ;;  %1657 = vmatprep.subr.bf16.mxu1 (%p625_p1), %v1766_v20 }
 0x27e   :  { %1623 = vmatpush3.bf16.msra.mxu0 (%p625_p1), %v1767_v27  ;;  %1665 = vmatpush3.bf16.msra.mxu1 (%p625_p1), %v1767_v27 }
 0x27f   :  { %1624 = vmatprep.subr.bf16.mxu0 (%p625_p1), %v1768_v28  ;;  %1658 = vmatprep.subr.bf16.mxu1 (%p625_p1), %v1768_v28 }
 0x282   :  { %1625 = vmatpush3.bf16.msra.mxu0 (%p625_p1), %v1769_v29  ;;  %1666 = vmatpush3.bf16.msra.mxu1 (%p625_p1), %v1769_v29 }
 0x283   :  { %1626 = vmatprep.subr.bf16.mxu0 (%p625_p1), %v1770_v30  ;;  %1659 = vmatprep.subr.bf16.mxu1 (%p625_p1), %v1770_v30 }
 0x286   :  { %1627 = vmatpush3.bf16.msra.mxu0 (%p625_p1), %v1771_v31  ;;  %1667 = vmatpush3.bf16.msra.mxu1 (%p625_p1), %v1771_v31 }
 0x287   : > { %v1755_v14 = vpop.eup %1754  ;;  %627 = sbr.rel (!%p625_p1) target bundleno = 335 (0x14f), region = 75 }
 0x288   : > { %v1189_v17 = vmul.f32 %v1755_v14, %v1753_v3 }
 0x28a   : > { %v1209_v16 = vsel %vm1208_vm5, %v1189_v17, 0.0  ;;  %v1216_v45 = vsel %vm1208_vm5, %v1189_v17, %v1884_v45  }
 0x28b   : > { %1213 = vst [vmem:[%s1212_s24 + $0x8] sm:$0xff] %v1209_v16 }
 0x292   :  { %v1219_v21 = vld [vmem:[#allocation2 + $0x8] sm:$0xff]  ;;  %v1221_v22 = vld [vmem:[#allocation2 + $0x18] sm:$0xff]  ;;  %v1218_v32 = vld [vmem:[#allocation2] sm:$0xff] }
 0x293   :  { %v1227_v23 = vld [vmem:[#allocation2 + $0x48] sm:$0xff]  ;;  %v1235_v24 = vpack.c.bf16 %v1221_v22, %v1219_v21  ;;  %v1229_v25 = vld [vmem:[#allocation2 + $0x58] sm:$0xff]  ;;  %v1220_v33 = vld [vmem:[#allocation2 + $0x10] sm:$0xff] }
 0x294   :  { %v1239_v26 = vpack.c.bf16 %v1229_v25, %v1227_v23  ;;  %v1226_v37 = vld [vmem:[#allocation2 + $0x40] sm:$0xff]  ;;  %v1228_v38 = vld [vmem:[#allocation2 + $0x50] sm:$0xff]  ;;  %v1223_v39 = vld [vmem:[#allocation2 + $0x28] sm:$0xff]  ;;  %v1234_v34 = vpack.c.bf16 %v1220_v33, %v1218_v32 }
 0x295   :  { %1409 = vmatprep.mubr.bf16.mxu0 %v1235_v24  ;;  %v1225_v40 = vld [vmem:[#allocation2 + $0x38] sm:$0xff]  ;;  %v1231_v59 = vld [vmem:[#allocation2 + $0x68] sm:$0xff]  ;;  %v1238_v35 = vpack.c.bf16 %v1228_v38, %v1226_v37  ;;  %v1222_v45 = vld [vmem:[#allocation2 + $0x20] sm:$0xff] }
 0x296   :  { %1425 = vmatprep.mubr.bf16.mxu1 %v1239_v26  ;;  %v1233_v61 = vld [vmem:[#allocation2 + $0x78] sm:$0xff]  ;;  %v1237_v36 = vpack.c.bf16 %v1225_v40, %v1223_v39  ;;  %1410 = vmatmul.mubr.bf16.vlgmr.msra.gmra.mxu0 %v1234_v34  ;;  %v1224_v60 = vld [vmem:[#allocation2 + $0x30] sm:$0xff]  ;;  %v1230_v41 = vld [vmem:[#allocation2 + $0x60] sm:$0xff] }
 0x297   :  { %v1241_v58 = vpack.c.bf16 %v1233_v61, %v1231_v59  ;;  %1426 = vmatmul.mubr.bf16.vlgmr.msra.gmra.mxu1 %v1238_v35  ;;  %v1232_v56 = vld [vmem:[#allocation2 + $0x70] sm:$0xff]  ;;  %v1236_v53 = vpack.c.bf16 %v1224_v60, %v1222_v45 }
 0x298   :  { %1417 = vmatprep.mubr.bf16.mxu0 %v1237_v36  ;;  %v1240_v52 = vpack.c.bf16 %v1232_v56, %v1230_v41 }
 0x299   :  { %1433 = vmatprep.mubr.bf16.mxu1 %v1241_v58 }
 0x29e   :  { %1418 = vmatmul.mubr.bf16.gmra.mxu0 %v1236_v53 }
 0x29f   :  { %1434 = vmatmul.mubr.bf16.gmra.mxu1 %v1240_v52 }
 0x356   :  { %v1628_v42 = vpop.f32.mrf.mxu0 }
 0x357   :  { %v1640_v54 = vpop.f32.mrf.mxu1 }
 0x358   :  { %v1629_v55 = vpop.f32.mrf.mxu0 }
 0x359   :  { %v1641_v63 = vpop.f32.mrf.mxu1  ;;  %v1630_v50 = vadd.f32 %v1629_v55, %v1628_v42 }
 0x35a   :  { %v1642_v43 = vadd.f32 %v1641_v63, %v1640_v54  ;;  %v1631_v51 = vpop.f32.mrf.mxu0 }
 0x35b   :  { %v1643_v46 = vpop.f32.mrf.mxu1  ;;  %v1412_v57 = vadd.f32 %v1630_v50, %v1591_v48 }
 0x35c   :  { %v1428_v49 = vadd.f32 %v1642_v43, %v1591_v48  ;;  %v1632_v9 = vpop.f32.mrf.mxu0 }
 0x35d   :  { %v1644_v44 = vpop.f32.mrf.mxu1  ;;  %1442 = vst [vmem:[#allocation10] sm:$0xff] %v1412_v57  ;;  %v1633_v6 = vadd.f32 %v1632_v9, %v1631_v51 }
 0x35e   :  { %1446 = vst [vmem:[#allocation10 + $0x20] sm:$0xff] %v1428_v49  ;;  %v1645_v4 = vadd.f32 %v1644_v44, %v1643_v46  ;;  %v1634_v10 = vpop.f32.mrf.mxu0 }
 0x35f   :  { %v1646_v11 = vpop.f32.mrf.mxu1  ;;  %v1415_v12 = vadd.f32 %v1633_v6, %v1591_v48 }
 0x360   :  { %v1431_v13 = vadd.f32 %v1645_v4, %v1591_v48  ;;  %v1635_v1 = vpop.f32.mrf.mxu0 }
 0x361   :  { %v1647_v3 = vpop.f32.mrf.mxu1  ;;  %1443 = vst [vmem:[#allocation10 + $0x8] sm:$0xff] %v1415_v12  ;;  %v1636_v14 = vadd.f32 %v1635_v1, %v1634_v10 }
 0x362   :  { %1447 = vst [vmem:[#allocation10 + $0x28] sm:$0xff] %v1431_v13  ;;  %v1648_v17 = vadd.f32 %v1647_v3, %v1646_v11  ;;  %v1637_v16 = vpop.f32.mrf.mxu0 }
 0x363   :  { %v1649_v2 = vpop.f32.mrf.mxu1  ;;  %v1420_v7 = vadd.f32 %v1636_v14, %v1591_v48 }
 0x364   :  { %v1436_v15 = vadd.f32 %v1648_v17, %v1591_v48  ;;  %v1638_v62 = vpop.f32.mrf.mxu0 }
 0x365   :  { %v1650_v5 = vpop.f32.mrf.mxu1  ;;  %1444 = vst [vmem:[#allocation10 + $0x10] sm:$0xff] %v1420_v7  ;;  %v1639_v0 = vadd.f32 %v1638_v62, %v1637_v16 }
 0x366   :  { %1448 = vst [vmem:[#allocation10 + $0x30] sm:$0xff] %v1436_v15  ;;  %v1651_v47 = vadd.f32 %v1650_v5, %v1649_v2 }
 0x367   :  { %v1423_v8 = vadd.f32 %v1639_v0, %v1591_v48 }
 0x368   :  { %v1439_v18 = vadd.f32 %v1651_v47, %v1591_v48 }
 0x369   :  { %1445 = vst [vmem:[#allocation10 + $0x18] sm:$0xff] %v1423_v8 }
 0x36a   :  { %1449 = vst [vmem:[#allocation10 + $0x38] sm:$0xff] %v1439_v18 }
 0x36b   :  { %1843 = shalt.err (!%p1840_p6)
}
 0x36c   :  { %s1909_s29 = smov 128   ;;  %s1910_s2 = smov 8  }
 0x36d   :  { %1461 = dma.vmem_to_hbm [thread:$0]  %s1456_s27, 1024, %s2487_s8, [#allocation6], %s1909_s29, %s1909_s29, %s1910_s2  }
 0x36e   :  { %1876 = dma.done.wait [#allocation6], 1024  }
 0x36f   :  { %1877 = vsyncadd [#allocation6], 4294966272 }
 0x370   :  { %1465 = vsyncpa [#allocation5], 1 }
 0x371   :  { %1466 = vsyncpa [#allocation8], 1 }
 0x372   :  { %1467 = vsyncpa [#allocation6], 1 }

</bundles_post_ra>
